<compile_context>
chip_gen: v7x
topology: tpu7x:2x2x1
jax: 0.10.0
libtpu: 0.0.40
codegen_flags: <defaults>
</compile_context>

<pallas_src>
from functools import partial

import numpy as np
import jax
import jax.numpy as jnp
from jax import lax
from jax.experimental import pallas as pl
from jax.experimental.pallas import tpu as pltpu


# ----------------------------------------------------------------------------
# helpers
# ----------------------------------------------------------------------------
def _round_up(x, m):
    return ((x + m - 1) // m) * m


def _pick_tile_m(m, max_tile=512):
    """Row tile (multiple of 8).  Guarantees the caller can build >= 2 grid
    steps (v7x 2-TC sharding + pipeline overlap) and caps the tile so the
    fc+heads kernel stays well inside v5e's 16 MiB scoped-VMEM default."""
    if m <= 2 * max_tile:
        return max(8, _round_up(pl.cdiv(m, 2), 8))
    best_t, best_pad = max_tile, pl.cdiv(m, max_tile) * max_tile
    for t in range(max_tile, 127, -8):
        padded = pl.cdiv(m, t) * t
        if padded < best_pad:
            best_t, best_pad = t, padded
    return best_t


# ----------------------------------------------------------------------------
# Pallas kernel: fused trunk-fc + policy + critic heads
#   feat = relu(x @ Wfc + bfc)      (staged through a bf16 VMEM scratch)
#   out  = feat @ Whead + bhead     (Whead = [Wpi | Wv | 0-pad] -> 128 lanes)
# ----------------------------------------------------------------------------
def _fc_heads_kernel(x_ref, wfc_ref, bfc_ref, wh_ref, bh_ref, o_ref, feat_ref):
    feat = jnp.dot(x_ref[...], wfc_ref[...], preferred_element_type=jnp.float32)
    feat = jnp.maximum(feat + bfc_ref[...], 0.0)
    # Stage the intermediate through an explicit VMEM scratch between the two
    # MXU bursts (review: bounds the live working set, avoids vreg spill soup).
    feat_ref[...] = feat.astype(jnp.bfloat16)
    heads = jnp.dot(feat_ref[...], wh_ref[...], preferred_element_type=jnp.float32)
    o_ref[...] = heads + bh_ref[...]


def pallas_fc_heads(x, wfc, bfc, wh, bh, *, max_tile=512):
    """x: (M, 1568) bf16-castable; returns (M, 128) f32 (policy|value|pad)."""
    m, k = x.shape
    nf = wfc.shape[1]          # 512
    nh = wh.shape[1]           # 128 (lane-dense packed heads)

    tile_m = _pick_tile_m(m, max_tile)
    num_tiles = max(2, pl.cdiv(m, tile_m))      # >= 2 grid steps, always
    mp = num_tiles * tile_m
    if mp != m:
        x = jnp.pad(x, ((0, mp - m), (0, 0)))

    out = pl.pallas_call(
        _fc_heads_kernel,
        out_shape=jax.ShapeDtypeStruct((mp, nh), jnp.float32),
        grid=(num_tiles,),
        in_specs=[
            pl.BlockSpec((tile_m, k), lambda i: (i, 0)),
            pl.BlockSpec((k, nf), lambda i: (0, 0)),     # wfc resident in VMEM
            pl.BlockSpec((1, nf), lambda i: (0, 0)),     # bfc resident in VMEM
            pl.BlockSpec((nf, nh), lambda i: (0, 0)),    # packed head weights
            pl.BlockSpec((1, nh), lambda i: (0, 0)),     # packed head bias
        ],
        out_specs=pl.BlockSpec((tile_m, nh), lambda i: (i, 0)),
        scratch_shapes=[pltpu.VMEM((tile_m, nf), jnp.bfloat16)],
        compiler_params=pltpu.CompilerParams(dimension_semantics=("parallel",)),
    )(x.astype(jnp.bfloat16), wfc.astype(jnp.bfloat16),
      bfc.reshape(1, nf).astype(jnp.float32),
      wh.astype(jnp.bfloat16), bh.reshape(1, nh).astype(jnp.float32))
    return out[:m] if mp != m else out


# ----------------------------------------------------------------------------
# Conv stage: XLA native TPU conv (no im2col HBM blow-up), bias+ReLU fused.
# bf16 operands, f32 accumulation, bf16 activations between layers.
# ----------------------------------------------------------------------------
def conv2d_relu(x, w_hwio, b, stride, *, lhs_spec="NHWC"):
    y = lax.conv_general_dilated(
        x, w_hwio,
        window_strides=(stride, stride),
        padding="VALID",
        dimension_numbers=(lhs_spec, "HWIO", "NHWC"),
        preferred_element_type=jnp.float32)
    y = jnp.maximum(y + b.reshape(1, 1, 1, -1).astype(jnp.float32), 0.0)
    return y.astype(jnp.bfloat16)


# ----------------------------------------------------------------------------
# Parameter init (orthogonal like nn.init.orthogonal_, zero bias)
# ----------------------------------------------------------------------------
def orthogonal_init(key, shape, gain):
    out = shape[0]
    fan_in = int(np.prod(shape[1:]))
    rows, cols = max(out, fan_in), min(out, fan_in)
    a = jax.random.normal(key, (rows, cols), dtype=jnp.float32)
    q, r = jnp.linalg.qr(a)
    q = q * jnp.sign(jnp.diag(r))[None, :]
    if out < fan_in:
        q = q.T
    return (gain * q[:out, :fan_in]).reshape(shape).astype(jnp.float32)


def make_params(key, num_inputs, num_outputs):
    """PyTorch-layout parameters (orthogonal weights, zero bias)."""
    ks = jax.random.split(key, 6)
    relu_gain = float(np.sqrt(2.0))
    p = {}
    p["w1"] = orthogonal_init(ks[0], (32, num_inputs, 8, 8), relu_gain)
    p["b1"] = jnp.zeros((32,), jnp.float32)
    p["w2"] = orthogonal_init(ks[1], (64, 32, 4, 4), relu_gain)
    p["b2"] = jnp.zeros((64,), jnp.float32)
    p["w3"] = orthogonal_init(ks[2], (32, 64, 3, 3), relu_gain)
    p["b3"] = jnp.zeros((32,), jnp.float32)
    p["wfc"] = orthogonal_init(ks[3], (512, 32 * 7 * 7), relu_gain)
    p["bfc"] = jnp.zeros((512,), jnp.float32)
    p["wpi"] = orthogonal_init(ks[4], (num_outputs, 512), 0.01)
    p["bpi"] = jnp.zeros((num_outputs,), jnp.float32)
    p["wv"] = orthogonal_init(ks[5], (1, 512), 1.0)
    p["bv"] = jnp.zeros((1,), jnp.float32)
    return p


def prepare_params(p):
    """One-time layout/dtype folding so the forward pass does zero transposes."""
    def conv_w(w):
        # (Cout, Cin, KH, KW) -> HWIO (KH, KW, Cin, Cout), bf16 for the MXU.
        return jnp.transpose(w, (2, 3, 1, 0)).astype(jnp.bfloat16)

    kp = {}
    kp["w1"], kp["b1"] = conv_w(p["w1"]), p["b1"]
    kp["w2"], kp["b2"] = conv_w(p["w2"]), p["b2"]
    kp["w3"], kp["b3"] = conv_w(p["w3"]), p["b3"]

    # fc: fold PyTorch's NCHW flatten order (c,h,w) into our NHWC flatten (h,w,c).
    f_out, f_in = p["wfc"].shape
    c3 = p["w3"].shape[0]
    hw = int(round(np.sqrt(f_in // c3)))
    wfc = p["wfc"].reshape(f_out, c3, hw, hw).transpose(2, 3, 1, 0).reshape(f_in, f_out)
    kp["wfc"], kp["bfc"] = wfc.astype(jnp.bfloat16), p["bfc"]

    # heads: pack policy + critic into one lane-dense (512, 128) weight.
    a = p["wpi"].shape[0]
    nh = max(128, _round_up(a + 1, 128))
    wh = jnp.zeros((f_out, nh), jnp.float32)
    wh = wh.at[:, :a].set(p["wpi"].T).at[:, a].set(p["wv"][0])
    bh = jnp.zeros((nh,), jnp.float32).at[:a].set(p["bpi"]).at[a].set(p["bv"][0])
    kp["whead"], kp["bhead"] = wh.astype(jnp.bfloat16), bh
    return kp


# ----------------------------------------------------------------------------
# Forward pass: (policy_logits, critic, states)
# ----------------------------------------------------------------------------
def time_distributed_conv_forward(kparams, inputs, masks, states, *, num_outputs):
    # inputs: (B, T, C, 84, 84).  masks is unused by the reference forward;
    # states are passed through unchanged (reference parity).
    b, t, c, h, w = inputs.shape
    x = inputs.reshape(b * t, c, h, w).astype(jnp.bfloat16)

    # conv1 consumes NCHW directly (layout change folded into the conv read).
    x = conv2d_relu(x, kparams["w1"], kparams["b1"], 4, lhs_spec="NCHW")  # (BT,20,20,32)
    x = conv2d_relu(x, kparams["w2"], kparams["b2"], 2)                   # (BT, 9, 9,64)
    x = conv2d_relu(x, kparams["w3"], kparams["b3"], 1)                   # (BT, 7, 7,32)

    x = x.reshape(b * t, -1)                             # (BT,1568), (h,w,c) order; free reshape
    heads = pallas_fc_heads(x, kparams["wfc"], kparams["bfc"],
                            kparams["whead"], kparams["bhead"])           # (BT,128) f32

    policy = heads[:, :num_outputs].reshape(b, t, num_outputs)
    critic = heads[:, num_outputs:num_outputs + 1].reshape(b, t, 1)
    return policy, critic, states


if __name__ == "__main__":
    key = jax.random.PRNGKey(0)
    k_in, k_par = jax.random.split(key)

    B, T = 2, 2
    NUM_INPUTS = 4        # input channels
    NUM_OUTPUTS = 6       # action logits
    H = W = 84            # required so that 32*7*7 matches the Linear(1568, 512)

    inputs = jax.random.normal(k_in, (B, T, NUM_INPUTS, H, W), dtype=jnp.float32)
    masks = jnp.ones((B, T), dtype=jnp.float32)       # unused in forward (parity)
    states = jnp.zeros((B, T, 1), dtype=jnp.float32)  # passed through unchanged

    params = make_params(k_par, NUM_INPUTS, NUM_OUTPUTS)
    kparams = prepare_params(params)

    fwd = jax.jit(partial(time_distributed_conv_forward, num_outputs=NUM_OUTPUTS))
    policy_logits, critic, out_states = fwd(kparams, inputs, masks, states)

    jax.block_until_ready(policy_logits)
    jax.block_until_ready(critic)
    jax.block_until_ready(out_states)

    assert policy_logits.shape == (B, T, NUM_OUTPUTS)
    assert critic.shape == (B, T, 1)
    assert out_states.shape == states.shape
    assert policy_logits.dtype == jnp.float32 and critic.dtype == jnp.float32
    assert bool(jnp.all(jnp.isfinite(policy_logits))) and bool(jnp.all(jnp.isfinite(critic)))

    print("KERNEL_OK")
</pallas_src>

<mosaic_0001>
module attributes {stable_mosaic.version = 11 : i64} {
  func.func @_fc_heads_kernel(%arg0: i32, %arg1: memref<8x1568xbf16, #tpu.memory_space<vmem>>, %arg2: memref<1568x512xbf16, #tpu.memory_space<vmem>>, %arg3: memref<1x512xf32, #tpu.memory_space<vmem>>, %arg4: memref<512x128xbf16, #tpu.memory_space<vmem>>, %arg5: memref<1x128xf32, #tpu.memory_space<vmem>>, %arg6: memref<8x128xf32, #tpu.memory_space<vmem>>, %arg7: memref<8x512xbf16, #tpu.memory_space<vmem>>) attributes {dimension_semantics = [#tpu.dimension_semantics<parallel>], iteration_bounds = array<i64: 2>, scalar_prefetch = 0 : i64, scratch_operands = 1 : i64, tpu.core_type = #tpu.core_type<tc>, window_params = [{transform_indices = @transform_0, window_bounds = array<i64: 8, 1568>}, {pipeline_mode = #tpu.pipeline_mode<synchronous>, transform_indices = @transform_1, window_bounds = array<i64: 1568, 512>}, {pipeline_mode = #tpu.pipeline_mode<synchronous>, transform_indices = @transform_2, window_bounds = array<i64: 1, 512>}, {pipeline_mode = #tpu.pipeline_mode<synchronous>, transform_indices = @transform_3, window_bounds = array<i64: 512, 128>}, {pipeline_mode = #tpu.pipeline_mode<synchronous>, transform_indices = @transform_4, window_bounds = array<i64: 1, 128>}, {transform_indices = @transform_5, window_bounds = array<i64: 8, 128>}]} {
    %c0 = arith.constant 0 : index
    %c0_0 = arith.constant 0 : index
    %0 = vector.load %arg1[%c0, %c0_0] : memref<8x1568xbf16, #tpu.memory_space<vmem>>, vector<8x1568xbf16>
    %c0_1 = arith.constant 0 : index
    %c0_2 = arith.constant 0 : index
    %1 = vector.load %arg2[%c0_1, %c0_2] : memref<1568x512xbf16, #tpu.memory_space<vmem>>, vector<1568x512xbf16>
    %cst = arith.constant dense<0.000000e+00> : vector<8x512xf32>
    %2 = tpu.matmul %0, %1, %cst {dimension_numbers = #tpu.dot_dimension_numbers<[1], [0], [0], [1], [0, 0, 1, 1], [], []>} : vector<8x1568xbf16>, vector<1568x512xbf16>, vector<8x512xf32> -> vector<8x512xf32>
    %c0_3 = arith.constant 0 : index
    %c0_4 = arith.constant 0 : index
    %3 = vector.load %arg3[%c0_3, %c0_4] : memref<1x512xf32, #tpu.memory_space<vmem>>, vector<1x512xf32>
    %4 = vector.broadcast %3 : vector<1x512xf32> to vector<8x512xf32>
    %5 = arith.addf %2, %4 : vector<8x512xf32>
    %cst_5 = arith.constant 0.000000e+00 : f32
    %6 = vector.broadcast %cst_5 : f32 to vector<8x512xf32>
    %7 = arith.maximumf %5, %6 : vector<8x512xf32>
    %8 = arith.truncf %7 : vector<8x512xf32> to vector<8x512xbf16>
    %c0_6 = arith.constant 0 : index
    %c0_7 = arith.constant 0 : index
    %9 = vector.load %arg7[%c0_6, %c0_7] : memref<8x512xbf16, #tpu.memory_space<vmem>>, vector<8x512xbf16>
    tpu.vector_store %arg7[%c0_6, %c0_7], %8 {strides = array<i32>} : memref<8x512xbf16, #tpu.memory_space<vmem>>, vector<8x512xbf16>,
    %c0_8 = arith.constant 0 : index
    %c0_9 = arith.constant 0 : index
    %10 = vector.load %arg7[%c0_8, %c0_9] : memref<8x512xbf16, #tpu.memory_space<vmem>>, vector<8x512xbf16>
    %c0_10 = arith.constant 0 : index
    %c0_11 = arith.constant 0 : index
    %11 = vector.load %arg4[%c0_10, %c0_11] : memref<512x128xbf16, #tpu.memory_space<vmem>>, vector<512x128xbf16>
    %cst_12 = arith.constant dense<0.000000e+00> : vector<8x128xf32>
    %12 = tpu.matmul %10, %11, %cst_12 {dimension_numbers = #tpu.dot_dimension_numbers<[1], [0], [0], [1], [0, 0, 1, 1], [], []>} : vector<8x512xbf16>, vector<512x128xbf16>, vector<8x128xf32> -> vector<8x128xf32>
    %c0_13 = arith.constant 0 : index
    %c0_14 = arith.constant 0 : index
    %13 = vector.load %arg5[%c0_13, %c0_14] : memref<1x128xf32, #tpu.memory_space<vmem>>, vector<1x128xf32>
    %14 = vector.broadcast %13 : vector<1x128xf32> to vector<8x128xf32>
    %15 = arith.addf %12, %14 : vector<8x128xf32>
    %c0_15 = arith.constant 0 : index
    %c0_16 = arith.constant 0 : index
    %16 = vector.load %arg6[%c0_15, %c0_16] : memref<8x128xf32, #tpu.memory_space<vmem>>, vector<8x128xf32>
    tpu.vector_store %arg6[%c0_15, %c0_16], %15 {strides = array<i32>} : memref<8x128xf32, #tpu.memory_space<vmem>>, vector<8x128xf32>,
    return
  }
  func.func @transform_0(%arg0: i32) -> (i32, i32) {
    %c0_i32 = arith.constant 0 : i32
    %c0_i32_0 = arith.constant 0 : i32
    return %arg0, %c0_i32 : i32, i32
  }
  func.func @transform_1(%arg0: i32) -> (i32, i32) {
    %c0_i32 = arith.constant 0 : i32
    %c0_i32_0 = arith.constant 0 : i32
    %c0_i32_1 = arith.constant 0 : i32
    return %c0_i32, %c0_i32_0 : i32, i32
  }
  func.func @transform_2(%arg0: i32) -> (i32, i32) {
    %c0_i32 = arith.constant 0 : i32
    %c0_i32_0 = arith.constant 0 : i32
    %c0_i32_1 = arith.constant 0 : i32
    return %c0_i32, %c0_i32_0 : i32, i32
  }
  func.func @transform_3(%arg0: i32) -> (i32, i32) {
    %c0_i32 = arith.constant 0 : i32
    %c0_i32_0 = arith.constant 0 : i32
    %c0_i32_1 = arith.constant 0 : i32
    return %c0_i32, %c0_i32_0 : i32, i32
  }
  func.func @transform_4(%arg0: i32) -> (i32, i32) {
    %c0_i32 = arith.constant 0 : i32
    %c0_i32_0 = arith.constant 0 : i32
    %c0_i32_1 = arith.constant 0 : i32
    return %c0_i32, %c0_i32_0 : i32, i32
  }
  func.func @transform_5(%arg0: i32) -> (i32, i32) {
    %c0_i32 = arith.constant 0 : i32
    %c0_i32_0 = arith.constant 0 : i32
    return %arg0, %c0_i32 : i32, i32
  }
}

</mosaic_0001>

<bundles_post_ra>
// kernel: time_distributed_conv_forward.1
= control target key start
LH: loop header
LB: loop body
LE: loop exit
PB: predicated region body
PF: predicated region fallthrough
CT: control target
= control target key end

     0   :  { %s4902_s18 = smov 0   ;;  %s6244_s0 = inlined_call_operand.vmem [shape: bf16[16,1568], index: 0, kind: input, shape index: {}]   ;;  %s6245_s1 = inlined_call_operand.vmem [shape: bf16[1568,512], index: 1, kind: input, shape index: {}]   ;;  %s6246_s2 = inlined_call_operand.vmem [shape: f32[1,512], index: 2, kind: input, shape index: {}]   ;;  %s6247_s3 = inlined_call_operand.vmem [shape: bf16[512,128], index: 3, kind: input, shape index: {}]   ;;  %s6248_s4 = inlined_call_operand.vmem [shape: f32[1,128], index: 4, kind: input, shape index: {}]   ;;  %s6249_s5 = inlined_call_operand.vmem [shape: f32[16,128], index: 5, kind: output, shape index: {}]  }
   0x1 LB: > { %s3663_s19 = sadd.s32 4294967295, %s4869_s18   ;;  %p3667_p0 = scmp.ge.s32.totalorder %s4869_s18, 1  ;;  %s4869_s18 = sphi %s4902_s18, %s15_s18  }
   0x2   : > { %p187_p1 = scmp.lt.s32.totalorder %s4869_s18, 3 }
   0x4   : > { %p188_p2 = pnand %p3667_p0, %p187_p1 }
   0x5   : > { %v4230_v0 = vld [vmem:[%s6245_s1 + $0x4] ss:$16 sps:$4 sm:$0xff] (!%p188_p2)   ;;  %v4232_v1 = vld [vmem:[%s6245_s1 + $0xc] ss:$16 sps:$4 sm:$0xff] (!%p188_p2)   ;;  %v4234_v2 = vld [vmem:[%s6245_s1] ss:$16 sps:$4 sm:$0xff] (!%p188_p2)  }
   0x6   : > { %191 = sbr.rel (%p188_p2) target bundleno = 842 (0x34a), region = 40  ;;  %2654 = vmatprep.subr.bf16.mxu0 (!%p188_p2), %v4230_v0  ;;  %v4235_v3 = vld [vmem:[%s6245_s1 + $0x8] ss:$16 sps:$4 sm:$0xff] (!%p188_p2)   ;;  %2941 = vmatprep.subr.bf16.mxu1 (!%p188_p2), %v4232_v1  ;;  %v4236_v4 = vld [vmem:[%s6245_s1 + $0x24] ss:$16 sps:$4 sm:$0xff] (!%p188_p2)   ;;  %p214_p3 = scmp.lt.s32.totalorder (!%p188_p2), %s3663_s19, 1 }
   0x7   : > { %2655 = vmatpush1.bf16.msra.mxu0 (!%p188_p2), %v4234_v2  ;;  %2942 = vmatpush1.bf16.msra.mxu1 (!%p188_p2), %v4235_v3  ;;  %v4238_v5 = vld [vmem:[%s6245_s1 + $0x2c] ss:$16 sps:$4 sm:$0xff] (!%p188_p2)   ;;  %v4240_v6 = vld [vmem:[%s6245_s1 + $0x20] ss:$16 sps:$4 sm:$0xff] (!%p188_p2)   ;;  %v4241_v7 = vld [vmem:[%s6245_s1 + $0x28] ss:$16 sps:$4 sm:$0xff] (!%p188_p2)  }
   0x8   : > { %2656 = vmatprep.subr.bf16.mxu0 (!%p188_p2), %v4236_v4  ;;  %2943 = vmatprep.subr.bf16.mxu1 (!%p188_p2), %v4238_v5  ;;  %v4242_v8 = vld [vmem:[%s6245_s1 + $0x44] ss:$16 sps:$4 sm:$0xff] (!%p188_p2)   ;;  %v4244_v9 = vld [vmem:[%s6245_s1 + $0x4c] ss:$16 sps:$4 sm:$0xff] (!%p188_p2)   ;;  %v4246_v10 = vld [vmem:[%s6245_s1 + $0x40] ss:$16 sps:$4 sm:$0xff] (!%p188_p2)  }
   0x9   : > { %v4247_v11 = vld [vmem:[%s6245_s1 + $0x48] ss:$16 sps:$4 sm:$0xff] (!%p188_p2)   ;;  %v4248_v12 = vld [vmem:[%s6245_s1 + $0x64] ss:$16 sps:$4 sm:$0xff] (!%p188_p2)   ;;  %v4250_v13 = vld [vmem:[%s6245_s1 + $0x6c] ss:$16 sps:$4 sm:$0xff] (!%p188_p2)  }
   0xa   : > { %v4252_v14 = vld [vmem:[%s6245_s1 + $0x60] ss:$16 sps:$4 sm:$0xff] (!%p188_p2)   ;;  %v4253_v15 = vld [vmem:[%s6245_s1 + $0x68] ss:$16 sps:$4 sm:$0xff] (!%p188_p2)   ;;  %v4254_v16 = vld [vmem:[%s6245_s1 + $0x84] ss:$16 sps:$4 sm:$0xff] (!%p188_p2)  }
   0xb   : > { %2657 = vmatpush1.bf16.msra.mxu0 (!%p188_p2), %v4240_v6  ;;  %2944 = vmatpush1.bf16.msra.mxu1 (!%p188_p2), %v4241_v7  ;;  %v4256_v17 = vld [vmem:[%s6245_s1 + $0x8c] ss:$16 sps:$4 sm:$0xff] (!%p188_p2)   ;;  %v4258_v18 = vld [vmem:[%s6245_s1 + $0x80] ss:$16 sps:$4 sm:$0xff] (!%p188_p2)   ;;  %v4259_v19 = vld [vmem:[%s6245_s1 + $0x88] ss:$16 sps:$4 sm:$0xff] (!%p188_p2)  }
   0xc   : > { %2658 = vmatprep.subr.bf16.mxu0 (!%p188_p2), %v4242_v8  ;;  %2945 = vmatprep.subr.bf16.mxu1 (!%p188_p2), %v4244_v9  ;;  %v4260_v20 = vld [vmem:[%s6245_s1 + $0xa4] ss:$16 sps:$4 sm:$0xff] (!%p188_p2)   ;;  %v4262_v21 = vld [vmem:[%s6245_s1 + $0xac] ss:$16 sps:$4 sm:$0xff] (!%p188_p2)   ;;  %v4264_v22 = vld [vmem:[%s6245_s1 + $0xa0] ss:$16 sps:$4 sm:$0xff] (!%p188_p2)  }
   0xd   : > { %v4265_v23 = vld [vmem:[%s6245_s1 + $0xa8] ss:$16 sps:$4 sm:$0xff]   ;;  %v4266_v24 = vld [vmem:[%s6245_s1 + $0xc4] ss:$16 sps:$4 sm:$0xff]   ;;  %v4268_v25 = vld [vmem:[%s6245_s1 + $0xcc] ss:$16 sps:$4 sm:$0xff]  }
   0xe   : > { %v4270_v26 = vld [vmem:[%s6245_s1 + $0xc0] ss:$16 sps:$4 sm:$0xff]   ;;  %v4271_v27 = vld [vmem:[%s6245_s1 + $0xc8] ss:$16 sps:$4 sm:$0xff]   ;;  %v4272_v28 = vld [vmem:[%s6245_s1 + $0xe4] ss:$16 sps:$4 sm:$0xff]  }
   0xf   : > { %2659 = vmatpush1.bf16.msra.mxu0 %v4246_v10  ;;  %2946 = vmatpush1.bf16.msra.mxu1 %v4247_v11  ;;  %v4274_v29 = vld [vmem:[%s6245_s1 + $0xec] ss:$16 sps:$4 sm:$0xff]   ;;  %v4276_v30 = vld [vmem:[%s6245_s1 + $0xe0] ss:$16 sps:$4 sm:$0xff]   ;;  %v4277_v31 = vld [vmem:[%s6245_s1 + $0xe8] ss:$16 sps:$4 sm:$0xff]  }
  0x10   : > { %2660 = vmatprep.subr.bf16.mxu0 %v4248_v12  ;;  %2947 = vmatprep.subr.bf16.mxu1 %v4250_v13  ;;  %v4278_v32 = vld [vmem:[%s6245_s1 + $0x104] ss:$16 sps:$4 sm:$0xff]   ;;  %v4280_v33 = vld [vmem:[%s6245_s1 + $0x10c] ss:$16 sps:$4 sm:$0xff]   ;;  %v4282_v34 = vld [vmem:[%s6245_s1 + $0x100] ss:$16 sps:$4 sm:$0xff]  }
  0x11   : > { %v4283_v35 = vld [vmem:[%s6245_s1 + $0x108] ss:$16 sps:$4 sm:$0xff]   ;;  %s6251_s19 = smov (!%p214_p3, %s3663_s19), 1  ;;  %v4284_v36 = vld [vmem:[%s6245_s1 + $0x124] ss:$16 sps:$4 sm:$0xff]   ;;  %vm2650_vm0 = vcmask 261120  }
  0x12   : > { %v4286_v37 = vld [vmem:[%s6245_s1 + $0x12c] ss:$16 sps:$4 sm:$0xff]   ;;  %v4288_v38 = vld [vmem:[%s6245_s1 + $0x120] ss:$16 sps:$4 sm:$0xff]   ;;  %s4220_s29 = smul.u32 52, %s6251_s19  ;;  %s3669_s8 = sshll.u32 %s6251_s19, 3 }
  0x13   : > { %2661 = vmatpush1.bf16.msra.mxu0 %v4252_v14  ;;  %2948 = vmatpush1.bf16.msra.mxu1 %v4253_v15  ;;  %v4289_v39 = vld [vmem:[%s6245_s1 + $0x128] ss:$16 sps:$4 sm:$0xff]   ;;  %v4290_v40 = vld [vmem:[%s6245_s1 + $0x144] ss:$16 sps:$4 sm:$0xff]   ;;  %v4292_v41 = vld [vmem:[%s6245_s1 + $0x14c] ss:$16 sps:$4 sm:$0xff]   ;;  %s222_s11 = scalar_lea.vmem %s6249_s5, %s3669_s8 }
  0x14   : > { %2662 = vmatprep.subr.bf16.mxu0 %v4254_v16  ;;  %2949 = vmatprep.subr.bf16.mxu1 %v4256_v17  ;;  %v4294_v42 = vld [vmem:[%s6245_s1 + $0x140] ss:$16 sps:$4 sm:$0xff]   ;;  %v4295_v43 = vld [vmem:[%s6245_s1 + $0x148] ss:$16 sps:$4 sm:$0xff]   ;;  %s5052_s17 = scalar_lea.vmem %s6244_s0, %s4220_s29  ;;  %v4296_v44 = vld [vmem:[%s6245_s1 + $0x164] ss:$16 sps:$4 sm:$0xff]  }
  0x15   : > { %v4298_v45 = vld [vmem:[%s6245_s1 + $0x16c] ss:$16 sps:$4 sm:$0xff]   ;;  %v224_v46 = vld [vmem:[%s5052_s17] sm:$0xff]  ;;  %v4301_v49 = vld [vmem:[%s6245_s1 + $0x168] ss:$16 sps:$4 sm:$0xff]  }
  0x16   : > { %v4300_v47 = vld [vmem:[%s6245_s1 + $0x160] ss:$16 sps:$4 sm:$0xff]   ;;  %v3671_v48 = vcombine.high %v224_v46, %v224_v46  ;;  %v4302_v50 = vld [vmem:[%s6245_s1 + $0x184] ss:$16 sps:$4 sm:$0xff]   ;;  %v4304_v51 = vld [vmem:[%s6245_s1 + $0x18c] ss:$16 sps:$4 sm:$0xff]   ;;  %v3670_v4 = vcombine.low %v224_v46, %v224_v46 }
  0x17   : > { %2663 = vmatpush1.bf16.msra.mxu0 %v4258_v18  ;;  %2950 = vmatpush1.bf16.msra.mxu1 %v4259_v19  ;;  %v4306_v52 = vld [vmem:[%s6245_s1 + $0x180] ss:$16 sps:$4 sm:$0xff]   ;;  %v4307_v53 = vld [vmem:[%s6245_s1 + $0x188] ss:$16 sps:$4 sm:$0xff]   ;;  %v4308_v54 = vld [vmem:[%s6245_s1 + $0x1a4] ss:$16 sps:$4 sm:$0xff]  }
  0x18   : > { %2664 = vmatprep.subr.bf16.mxu0 %v4260_v20  ;;  %2951 = vmatprep.subr.bf16.mxu1 %v4262_v21  ;;  %v4310_v55 = vld [vmem:[%s6245_s1 + $0x1ac] ss:$16 sps:$4 sm:$0xff]   ;;  %v4312_v56 = vld [vmem:[%s6245_s1 + $0x1a0] ss:$16 sps:$4 sm:$0xff]   ;;  %v4313_v57 = vld [vmem:[%s6245_s1 + $0x1a8] ss:$16 sps:$4 sm:$0xff]  }
  0x19   : > { %2686 = vmatprep.mubr.bf16.mxu0 %v3671_v48  ;;  %2973 = vmatprep.mubr.bf16.mxu1 %v3671_v48  ;;  %v4314_v58 = vld [vmem:[%s6245_s1 + $0x1c4] ss:$16 sps:$4 sm:$0xff]   ;;  %v4316_v59 = vld [vmem:[%s6245_s1 + $0x1cc] ss:$16 sps:$4 sm:$0xff]   ;;  %v4318_v60 = vld [vmem:[%s6245_s1 + $0x1c0] ss:$16 sps:$4 sm:$0xff]  }
  0x1a   : > { %v4319_v61 = vld [vmem:[%s6245_s1 + $0x1c8] ss:$16 sps:$4 sm:$0xff]   ;;  %v4320_v62 = vld [vmem:[%s6245_s1 + $0x1e4] ss:$16 sps:$4 sm:$0xff]   ;;  %v4322_v63 = vld [vmem:[%s6245_s1 + $0x1ec] ss:$16 sps:$4 sm:$0xff]  }
  0x1b   : > { %2665 = vmatpush1.bf16.msra.mxu0 %v4264_v22  ;;  %2952 = vmatpush1.bf16.msra.mxu1 %v4265_v23  ;;  %v4324_v0 = vld [vmem:[%s6245_s1 + $0x1e0] ss:$16 sps:$4 sm:$0xff]   ;;  %v4325_v1 = vld [vmem:[%s6245_s1 + $0x1e8] ss:$16 sps:$4 sm:$0xff]   ;;  %v4330_v2 = vld [vmem:[%s6245_s1 + $0x204] ss:$16 sps:$4 sm:$0xff]  }
  0x1c   : > { %2666 = vmatprep.subr.bf16.mxu0 %v4266_v24  ;;  %2953 = vmatprep.subr.bf16.mxu1 %v4268_v25  ;;  %v4333_v3 = vld [vmem:[%s6245_s1 + $0x20c] ss:$16 sps:$4 sm:$0xff]   ;;  %v4328_v5 = vld [vmem:[%s6245_s1 + $0x200] ss:$16 sps:$4 sm:$0xff]   ;;  %v4331_v6 = vld [vmem:[%s6245_s1 + $0x208] ss:$16 sps:$4 sm:$0xff]  }
  0x1d   : > { %v4336_v7 = vld [vmem:[%s6245_s1 + $0x224] ss:$16 sps:$4 sm:$0xff]   ;;  %v4339_v8 = vld [vmem:[%s6245_s1 + $0x22c] ss:$16 sps:$4 sm:$0xff]   ;;  %v4334_v9 = vld [vmem:[%s6245_s1 + $0x220] ss:$16 sps:$4 sm:$0xff]  }
  0x1e   : > { %v4337_v10 = vld [vmem:[%s6245_s1 + $0x228] ss:$16 sps:$4 sm:$0xff]   ;;  %v4342_v11 = vld [vmem:[%s6245_s1 + $0x244] ss:$16 sps:$4 sm:$0xff]   ;;  %v4345_v12 = vld [vmem:[%s6245_s1 + $0x24c] ss:$16 sps:$4 sm:$0xff]  }
  0x1f   : > { %2667 = vmatpush1.bf16.msra.mxu0 %v4270_v26  ;;  %2954 = vmatpush1.bf16.msra.mxu1 %v4271_v27  ;;  %v4340_v13 = vld [vmem:[%s6245_s1 + $0x240] ss:$16 sps:$4 sm:$0xff]   ;;  %v4343_v14 = vld [vmem:[%s6245_s1 + $0x248] ss:$16 sps:$4 sm:$0xff]   ;;  %v4348_v15 = vld [vmem:[%s6245_s1 + $0x264] ss:$16 sps:$4 sm:$0xff]  }
  0x20   : > { %2668 = vmatprep.subr.bf16.mxu0 %v4272_v28  ;;  %2955 = vmatprep.subr.bf16.mxu1 %v4274_v29  ;;  %v4351_v16 = vld [vmem:[%s6245_s1 + $0x26c] ss:$16 sps:$4 sm:$0xff]   ;;  %v4346_v17 = vld [vmem:[%s6245_s1 + $0x260] ss:$16 sps:$4 sm:$0xff]   ;;  %v4349_v18 = vld [vmem:[%s6245_s1 + $0x268] ss:$16 sps:$4 sm:$0xff]  }
  0x21   : > { %v4354_v19 = vld [vmem:[%s6245_s1 + $0x284] ss:$16 sps:$4 sm:$0xff]   ;;  %v4357_v20 = vld [vmem:[%s6245_s1 + $0x28c] ss:$16 sps:$4 sm:$0xff]   ;;  %v4352_v21 = vld [vmem:[%s6245_s1 + $0x280] ss:$16 sps:$4 sm:$0xff]  }
  0x22   : > { %v4355_v22 = vld [vmem:[%s6245_s1 + $0x288] ss:$16 sps:$4 sm:$0xff]   ;;  %v4360_v23 = vld [vmem:[%s6245_s1 + $0x2a4] ss:$16 sps:$4 sm:$0xff]   ;;  %v4363_v24 = vld [vmem:[%s6245_s1 + $0x2ac] ss:$16 sps:$4 sm:$0xff]  }
  0x23   : > { %2669 = vmatpush1.bf16.msra.mxu0 %v4276_v30  ;;  %2956 = vmatpush1.bf16.msra.mxu1 %v4277_v31  ;;  %v4358_v25 = vld [vmem:[%s6245_s1 + $0x2a0] ss:$16 sps:$4 sm:$0xff]   ;;  %v4361_v26 = vld [vmem:[%s6245_s1 + $0x2a8] ss:$16 sps:$4 sm:$0xff]   ;;  %v4366_v27 = vld [vmem:[%s6245_s1 + $0x2c4] ss:$16 sps:$4 sm:$0xff]  }
  0x24   : > { %2670 = vmatprep.subr.bf16.mxu0 %v4278_v32  ;;  %2957 = vmatprep.subr.bf16.mxu1 %v4280_v33  ;;  %v4369_v28 = vld [vmem:[%s6245_s1 + $0x2cc] ss:$16 sps:$4 sm:$0xff]   ;;  %v4364_v31 = vld [vmem:[%s6245_s1 + $0x2c0] ss:$16 sps:$4 sm:$0xff]   ;;  %v4367_v32 = vld [vmem:[%s6245_s1 + $0x2c8] ss:$16 sps:$4 sm:$0xff]  }
  0x25   : > { %v5194_v29 = vld [vmem:[%s5052_s17 + $0x8] sm:$0xff]  ;;  %v4372_v33 = vld [vmem:[%s6245_s1 + $0x2e4] ss:$16 sps:$4 sm:$0xff]  }
  0x26   : > { %v3673_v30 = vcombine.high %v5194_v29, %v5194_v29  ;;  %v4393_v46 = vld [vmem:[%s6245_s1 + $0x34c] ss:$16 sps:$4 sm:$0xff]   ;;  %v4391_v48 = vld [vmem:[%s6245_s1 + $0x348] ss:$16 sps:$4 sm:$0xff]  }
  0x27   : > { %2671 = vmatpush1.bf16.msra.mxu0 %v4282_v34  ;;  %2958 = vmatpush1.bf16.msra.mxu1 %v4283_v35  ;;  %v4375_v34 = vld [vmem:[%s6245_s1 + $0x2ec] ss:$16 sps:$4 sm:$0xff]   ;;  %v4370_v35 = vld [vmem:[%s6245_s1 + $0x2e0] ss:$16 sps:$4 sm:$0xff]  }
  0x28   : > { %2672 = vmatprep.subr.bf16.mxu0 %v4284_v36  ;;  %2959 = vmatprep.subr.bf16.mxu1 %v4286_v37  ;;  %v4373_v36 = vld [vmem:[%s6245_s1 + $0x2e8] ss:$16 sps:$4 sm:$0xff]   ;;  %v4378_v37 = vld [vmem:[%s6245_s1 + $0x304] ss:$16 sps:$4 sm:$0xff]  }
  0x2b   : > { %2673 = vmatpush1.bf16.msra.mxu0 %v4288_v38  ;;  %2960 = vmatpush1.bf16.msra.mxu1 %v4289_v39  ;;  %v4381_v38 = vld [vmem:[%s6245_s1 + $0x30c] ss:$16 sps:$4 sm:$0xff]   ;;  %v4376_v39 = vld [vmem:[%s6245_s1 + $0x300] ss:$16 sps:$4 sm:$0xff]  }
  0x2c   : > { %2674 = vmatprep.subr.bf16.mxu0 %v4290_v40  ;;  %2961 = vmatprep.subr.bf16.mxu1 %v4292_v41  ;;  %v4379_v40 = vld [vmem:[%s6245_s1 + $0x308] ss:$16 sps:$4 sm:$0xff]   ;;  %v4384_v41 = vld [vmem:[%s6245_s1 + $0x324] ss:$16 sps:$4 sm:$0xff]  }
  0x2f   : > { %2675 = vmatpush1.bf16.msra.mxu0 %v4294_v42  ;;  %2962 = vmatpush1.bf16.msra.mxu1 %v4295_v43  ;;  %v4387_v42 = vld [vmem:[%s6245_s1 + $0x32c] ss:$16 sps:$4 sm:$0xff]   ;;  %v4382_v43 = vld [vmem:[%s6245_s1 + $0x320] ss:$16 sps:$4 sm:$0xff]  }
  0x30   : > { %2676 = vmatprep.subr.bf16.mxu0 %v4296_v44  ;;  %2963 = vmatprep.subr.bf16.mxu1 %v4298_v45  ;;  %v4385_v44 = vld [vmem:[%s6245_s1 + $0x328] ss:$16 sps:$4 sm:$0xff]   ;;  %v4390_v45 = vld [vmem:[%s6245_s1 + $0x344] ss:$16 sps:$4 sm:$0xff]  }
  0x33   : > { %2677 = vmatpush1.bf16.msra.mxu0 %v4300_v47  ;;  %2964 = vmatpush1.bf16.msra.mxu1 %v4301_v49  ;;  %v4388_v47 = vld [vmem:[%s6245_s1 + $0x340] ss:$16 sps:$4 sm:$0xff]   ;;  %v4396_v49 = vld [vmem:[%s6245_s1 + $0x364] ss:$16 sps:$4 sm:$0xff]  }
  0x34   : > { %2678 = vmatprep.subr.bf16.mxu0 %v4302_v50  ;;  %2965 = vmatprep.subr.bf16.mxu1 %v4304_v51  ;;  %v4399_v50 = vld [vmem:[%s6245_s1 + $0x36c] ss:$16 sps:$4 sm:$0xff]   ;;  %v4394_v51 = vld [vmem:[%s6245_s1 + $0x360] ss:$16 sps:$4 sm:$0xff]  }
  0x37   : > { %2679 = vmatpush1.bf16.msra.mxu0 %v4306_v52  ;;  %2966 = vmatpush1.bf16.msra.mxu1 %v4307_v53  ;;  %v4397_v52 = vld [vmem:[%s6245_s1 + $0x368] ss:$16 sps:$4 sm:$0xff]   ;;  %v4402_v53 = vld [vmem:[%s6245_s1 + $0x384] ss:$16 sps:$4 sm:$0xff]  }
  0x38   : > { %2680 = vmatprep.subr.bf16.mxu0 %v4308_v54  ;;  %2967 = vmatprep.subr.bf16.mxu1 %v4310_v55  ;;  %v4405_v54 = vld [vmem:[%s6245_s1 + $0x38c] ss:$16 sps:$4 sm:$0xff]   ;;  %v4400_v55 = vld [vmem:[%s6245_s1 + $0x380] ss:$16 sps:$4 sm:$0xff]  }
  0x3b   : > { %2681 = vmatpush1.bf16.msra.mxu0 %v4312_v56  ;;  %2968 = vmatpush1.bf16.msra.mxu1 %v4313_v57  ;;  %v4403_v56 = vld [vmem:[%s6245_s1 + $0x388] ss:$16 sps:$4 sm:$0xff]   ;;  %v4408_v57 = vld [vmem:[%s6245_s1 + $0x3a4] ss:$16 sps:$4 sm:$0xff]  }
  0x3c   : > { %2682 = vmatprep.subr.bf16.mxu0 %v4314_v58  ;;  %2969 = vmatprep.subr.bf16.mxu1 %v4316_v59  ;;  %v4411_v58 = vld [vmem:[%s6245_s1 + $0x3ac] ss:$16 sps:$4 sm:$0xff]   ;;  %v4406_v59 = vld [vmem:[%s6245_s1 + $0x3a0] ss:$16 sps:$4 sm:$0xff]  }
  0x3f   : > { %2683 = vmatpush1.bf16.msra.mxu0 %v4318_v60  ;;  %2970 = vmatpush1.bf16.msra.mxu1 %v4319_v61  ;;  %v4409_v60 = vld [vmem:[%s6245_s1 + $0x3a8] ss:$16 sps:$4 sm:$0xff]   ;;  %v4414_v61 = vld [vmem:[%s6245_s1 + $0x3c4] ss:$16 sps:$4 sm:$0xff]  }
  0x40   : > { %2684 = vmatprep.subr.bf16.mxu0 %v4320_v62  ;;  %2971 = vmatprep.subr.bf16.mxu1 %v4322_v63  ;;  %v4417_v62 = vld [vmem:[%s6245_s1 + $0x3cc] ss:$16 sps:$4 sm:$0xff]   ;;  %v4412_v63 = vld [vmem:[%s6245_s1 + $0x3c0] ss:$16 sps:$4 sm:$0xff]  }
  0x43   : > { %2685 = vmatpush1.bf16.msra.mxu0 %v4324_v0  ;;  %2972 = vmatpush1.bf16.msra.mxu1 %v4325_v1  ;;  %v4415_v0 = vld [vmem:[%s6245_s1 + $0x3c8] ss:$16 sps:$4 sm:$0xff]   ;;  %v4420_v1 = vld [vmem:[%s6245_s1 + $0x3e4] ss:$16 sps:$4 sm:$0xff]  }
  0x44   : > { %2695 = vmatprep.subr.bf16.mxu0 %v4330_v2  ;;  %2982 = vmatprep.subr.bf16.mxu1 %v4333_v3  ;;  %v4423_v2 = vld [vmem:[%s6245_s1 + $0x3ec] ss:$16 sps:$4 sm:$0xff]   ;;  %v4418_v3 = vld [vmem:[%s6245_s1 + $0x3e0] ss:$16 sps:$4 sm:$0xff]  }
  0x46   : > { %2687 = vmatmul.mubr.bf16.vlgmr.msra.gmra.mrb[0].mxu0 %v3670_v4  ;;  %2974 = vmatmul.mubr.bf16.vlgmr.msra.gmra.mrb[0].mxu1 %v3670_v4  ;;  %v4421_v4 = vld [vmem:[%s6245_s1 + $0x3e8] ss:$16 sps:$4 sm:$0xff]  }
  0x47   : > { %2696 = vmatpush1.bf16.msra.mxu0 %v4328_v5  ;;  %2983 = vmatpush1.bf16.msra.mxu1 %v4331_v6  ;;  %v4428_v5 = vld [vmem:[%s6245_s1 + $0x404] ss:$16 sps:$4 sm:$0xff]   ;;  %v4431_v6 = vld [vmem:[%s6245_s1 + $0x40c] ss:$16 sps:$4 sm:$0xff]  }
  0x48   : > { %2697 = vmatprep.subr.bf16.mxu0 %v4336_v7  ;;  %2984 = vmatprep.subr.bf16.mxu1 %v4339_v8  ;;  %v3672_v7 = vcombine.low %v5194_v29, %v5194_v29  ;;  %v4426_v8 = vld [vmem:[%s6245_s1 + $0x400] ss:$16 sps:$4 sm:$0xff]   ;;  %v4461_v29 = vld [vmem:[%s6245_s1 + $0x4ac] ss:$16 sps:$4 sm:$0xff]  }
  0x49   : > { %2727 = vmatprep.mubr.bf16.mxu0 %v3673_v30  ;;  %3014 = vmatprep.mubr.bf16.mxu1 %v3673_v30  ;;  %v4456_v30 = vld [vmem:[%s6245_s1 + $0x4a0] ss:$16 sps:$4 sm:$0xff]  }
  0x4b   : > { %2698 = vmatpush1.bf16.msra.mxu0 %v4334_v9  ;;  %2985 = vmatpush1.bf16.msra.mxu1 %v4337_v10  ;;  %v4429_v9 = vld [vmem:[%s6245_s1 + $0x408] ss:$16 sps:$4 sm:$0xff]   ;;  %v4434_v10 = vld [vmem:[%s6245_s1 + $0x424] ss:$16 sps:$4 sm:$0xff]  }
  0x4c   : > { %2699 = vmatprep.subr.bf16.mxu0 %v4342_v11  ;;  %2986 = vmatprep.subr.bf16.mxu1 %v4345_v12  ;;  %v5330_v11 = vld [vmem:[%s5052_s17 + $0x10] sm:$0xff]  ;;  %v4437_v12 = vld [vmem:[%s6245_s1 + $0x42c] ss:$16 sps:$4 sm:$0xff]  }
  0x4f   : > { %2700 = vmatpush1.bf16.msra.mxu0 %v4340_v13  ;;  %2987 = vmatpush1.bf16.msra.mxu1 %v4343_v14  ;;  %v3675_v13 = vcombine.high %v5330_v11, %v5330_v11  ;;  %v4432_v14 = vld [vmem:[%s6245_s1 + $0x420] ss:$16 sps:$4 sm:$0xff]  }
  0x50   : > { %2701 = vmatprep.subr.bf16.mxu0 %v4348_v15  ;;  %2988 = vmatprep.subr.bf16.mxu1 %v4351_v16  ;;  %v4435_v15 = vld [vmem:[%s6245_s1 + $0x428] ss:$16 sps:$4 sm:$0xff]   ;;  %v4440_v16 = vld [vmem:[%s6245_s1 + $0x444] ss:$16 sps:$4 sm:$0xff]  }
  0x53   : > { %2702 = vmatpush1.bf16.msra.mxu0 %v4346_v17  ;;  %2989 = vmatpush1.bf16.msra.mxu1 %v4349_v18  ;;  %v4443_v17 = vld [vmem:[%s6245_s1 + $0x44c] ss:$16 sps:$4 sm:$0xff]   ;;  %v4438_v18 = vld [vmem:[%s6245_s1 + $0x440] ss:$16 sps:$4 sm:$0xff]  }
  0x54   : > { %2703 = vmatprep.subr.bf16.mxu0 %v4354_v19  ;;  %2990 = vmatprep.subr.bf16.mxu1 %v4357_v20  ;;  %v4441_v19 = vld [vmem:[%s6245_s1 + $0x448] ss:$16 sps:$4 sm:$0xff]   ;;  %v4446_v20 = vld [vmem:[%s6245_s1 + $0x464] ss:$16 sps:$4 sm:$0xff]  }
  0x57   : > { %2704 = vmatpush1.bf16.msra.mxu0 %v4352_v21  ;;  %2991 = vmatpush1.bf16.msra.mxu1 %v4355_v22  ;;  %v4449_v21 = vld [vmem:[%s6245_s1 + $0x46c] ss:$16 sps:$4 sm:$0xff]   ;;  %v4444_v22 = vld [vmem:[%s6245_s1 + $0x460] ss:$16 sps:$4 sm:$0xff]  }
  0x58   : > { %2705 = vmatprep.subr.bf16.mxu0 %v4360_v23  ;;  %2992 = vmatprep.subr.bf16.mxu1 %v4363_v24  ;;  %v4447_v23 = vld [vmem:[%s6245_s1 + $0x468] ss:$16 sps:$4 sm:$0xff]   ;;  %v4452_v24 = vld [vmem:[%s6245_s1 + $0x484] ss:$16 sps:$4 sm:$0xff]  }
  0x5b   : > { %2706 = vmatpush1.bf16.msra.mxu0 %v4358_v25  ;;  %2993 = vmatpush1.bf16.msra.mxu1 %v4361_v26  ;;  %v4455_v25 = vld [vmem:[%s6245_s1 + $0x48c] ss:$16 sps:$4 sm:$0xff]   ;;  %v4450_v26 = vld [vmem:[%s6245_s1 + $0x480] ss:$16 sps:$4 sm:$0xff]  }
  0x5c   : > { %2707 = vmatprep.subr.bf16.mxu0 %v4366_v27  ;;  %2994 = vmatprep.subr.bf16.mxu1 %v4369_v28  ;;  %v4453_v27 = vld [vmem:[%s6245_s1 + $0x488] ss:$16 sps:$4 sm:$0xff]   ;;  %v4458_v28 = vld [vmem:[%s6245_s1 + $0x4a4] ss:$16 sps:$4 sm:$0xff]  }
  0x5f   : > { %2708 = vmatpush1.bf16.msra.mxu0 %v4364_v31  ;;  %2995 = vmatpush1.bf16.msra.mxu1 %v4367_v32  ;;  %v4459_v31 = vld [vmem:[%s6245_s1 + $0x4a8] ss:$16 sps:$4 sm:$0xff]   ;;  %v4464_v32 = vld [vmem:[%s6245_s1 + $0x4c4] ss:$16 sps:$4 sm:$0xff]  }
  0x60   : > { %2709 = vmatprep.subr.bf16.mxu0 %v4372_v33  ;;  %2996 = vmatprep.subr.bf16.mxu1 %v4375_v34  ;;  %v4467_v33 = vld [vmem:[%s6245_s1 + $0x4cc] ss:$16 sps:$4 sm:$0xff]   ;;  %v4462_v34 = vld [vmem:[%s6245_s1 + $0x4c0] ss:$16 sps:$4 sm:$0xff]  }
  0x63   : > { %2710 = vmatpush1.bf16.msra.mxu0 %v4370_v35  ;;  %2997 = vmatpush1.bf16.msra.mxu1 %v4373_v36  ;;  %v4465_v35 = vld [vmem:[%s6245_s1 + $0x4c8] ss:$16 sps:$4 sm:$0xff]   ;;  %v4470_v36 = vld [vmem:[%s6245_s1 + $0x4e4] ss:$16 sps:$4 sm:$0xff]  }
  0x64   : > { %2711 = vmatprep.subr.bf16.mxu0 %v4378_v37  ;;  %2998 = vmatprep.subr.bf16.mxu1 %v4381_v38  ;;  %v4473_v37 = vld [vmem:[%s6245_s1 + $0x4ec] ss:$16 sps:$4 sm:$0xff]   ;;  %v4468_v38 = vld [vmem:[%s6245_s1 + $0x4e0] ss:$16 sps:$4 sm:$0xff]  }
  0x67   : > { %2712 = vmatpush1.bf16.msra.mxu0 %v4376_v39  ;;  %2999 = vmatpush1.bf16.msra.mxu1 %v4379_v40  ;;  %v4471_v39 = vld [vmem:[%s6245_s1 + $0x4e8] ss:$16 sps:$4 sm:$0xff]   ;;  %v4476_v40 = vld [vmem:[%s6245_s1 + $0x504] ss:$16 sps:$4 sm:$0xff]  }
  0x68   : > { %2713 = vmatprep.subr.bf16.mxu0 %v4384_v41  ;;  %3000 = vmatprep.subr.bf16.mxu1 %v4387_v42  ;;  %v4479_v41 = vld [vmem:[%s6245_s1 + $0x50c] ss:$16 sps:$4 sm:$0xff]   ;;  %v4474_v42 = vld [vmem:[%s6245_s1 + $0x500] ss:$16 sps:$4 sm:$0xff]  }
  0x6b   : > { %2714 = vmatpush1.bf16.msra.mxu0 %v4382_v43  ;;  %3001 = vmatpush1.bf16.msra.mxu1 %v4385_v44  ;;  %v4477_v43 = vld [vmem:[%s6245_s1 + $0x508] ss:$16 sps:$4 sm:$0xff]   ;;  %v4482_v44 = vld [vmem:[%s6245_s1 + $0x524] ss:$16 sps:$4 sm:$0xff]  }
  0x6c   : > { %2715 = vmatprep.subr.bf16.mxu0 %v4390_v45  ;;  %3002 = vmatprep.subr.bf16.mxu1 %v4393_v46  ;;  %v4485_v45 = vld [vmem:[%s6245_s1 + $0x52c] ss:$16 sps:$4 sm:$0xff]   ;;  %v4480_v46 = vld [vmem:[%s6245_s1 + $0x520] ss:$16 sps:$4 sm:$0xff]  }
  0x6f   : > { %2716 = vmatpush1.bf16.msra.mxu0 %v4388_v47  ;;  %3003 = vmatpush1.bf16.msra.mxu1 %v4391_v48  ;;  %v4483_v47 = vld [vmem:[%s6245_s1 + $0x528] ss:$16 sps:$4 sm:$0xff]   ;;  %v4488_v48 = vld [vmem:[%s6245_s1 + $0x544] ss:$16 sps:$4 sm:$0xff]  }
  0x70   : > { %2717 = vmatprep.subr.bf16.mxu0 %v4396_v49  ;;  %3004 = vmatprep.subr.bf16.mxu1 %v4399_v50  ;;  %v4491_v49 = vld [vmem:[%s6245_s1 + $0x54c] ss:$16 sps:$4 sm:$0xff]   ;;  %v4486_v50 = vld [vmem:[%s6245_s1 + $0x540] ss:$16 sps:$4 sm:$0xff]  }
  0x73   : > { %2718 = vmatpush1.bf16.msra.mxu0 %v4394_v51  ;;  %3005 = vmatpush1.bf16.msra.mxu1 %v4397_v52  ;;  %v4489_v51 = vld [vmem:[%s6245_s1 + $0x548] ss:$16 sps:$4 sm:$0xff]   ;;  %v4494_v52 = vld [vmem:[%s6245_s1 + $0x564] ss:$16 sps:$4 sm:$0xff]  }
  0x74   : > { %2719 = vmatprep.subr.bf16.mxu0 %v4402_v53  ;;  %3006 = vmatprep.subr.bf16.mxu1 %v4405_v54  ;;  %v4497_v53 = vld [vmem:[%s6245_s1 + $0x56c] ss:$16 sps:$4 sm:$0xff]   ;;  %v4492_v54 = vld [vmem:[%s6245_s1 + $0x560] ss:$16 sps:$4 sm:$0xff]  }
  0x77   : > { %2720 = vmatpush1.bf16.msra.mxu0 %v4400_v55  ;;  %3007 = vmatpush1.bf16.msra.mxu1 %v4403_v56  ;;  %v4495_v55 = vld [vmem:[%s6245_s1 + $0x568] ss:$16 sps:$4 sm:$0xff]   ;;  %v4500_v56 = vld [vmem:[%s6245_s1 + $0x584] ss:$16 sps:$4 sm:$0xff]  }
  0x78   : > { %2721 = vmatprep.subr.bf16.mxu0 %v4408_v57  ;;  %3008 = vmatprep.subr.bf16.mxu1 %v4411_v58  ;;  %v4503_v57 = vld [vmem:[%s6245_s1 + $0x58c] ss:$16 sps:$4 sm:$0xff]   ;;  %v4498_v58 = vld [vmem:[%s6245_s1 + $0x580] ss:$16 sps:$4 sm:$0xff]  }
  0x7b   : > { %2722 = vmatpush1.bf16.msra.mxu0 %v4406_v59  ;;  %3009 = vmatpush1.bf16.msra.mxu1 %v4409_v60  ;;  %v4501_v59 = vld [vmem:[%s6245_s1 + $0x588] ss:$16 sps:$4 sm:$0xff]   ;;  %v4506_v60 = vld [vmem:[%s6245_s1 + $0x5a4] ss:$16 sps:$4 sm:$0xff]  }
  0x7c   : > { %2723 = vmatprep.subr.bf16.mxu0 %v4414_v61  ;;  %3010 = vmatprep.subr.bf16.mxu1 %v4417_v62  ;;  %v4509_v61 = vld [vmem:[%s6245_s1 + $0x5ac] ss:$16 sps:$4 sm:$0xff]   ;;  %v4504_v62 = vld [vmem:[%s6245_s1 + $0x5a0] ss:$16 sps:$4 sm:$0xff]  }
  0x7f   : > { %2724 = vmatpush1.bf16.msra.mxu0 %v4412_v63  ;;  %3011 = vmatpush1.bf16.msra.mxu1 %v4415_v0  ;;  %v4507_v63 = vld [vmem:[%s6245_s1 + $0x5a8] ss:$16 sps:$4 sm:$0xff]   ;;  %v4512_v0 = vld [vmem:[%s6245_s1 + $0x5c4] ss:$16 sps:$4 sm:$0xff]  }
  0x80   : > { %2725 = vmatprep.subr.bf16.mxu0 %v4420_v1  ;;  %3012 = vmatprep.subr.bf16.mxu1 %v4423_v2  ;;  %v4515_v1 = vld [vmem:[%s6245_s1 + $0x5cc] ss:$16 sps:$4 sm:$0xff]   ;;  %v4510_v2 = vld [vmem:[%s6245_s1 + $0x5c0] ss:$16 sps:$4 sm:$0xff]  }
  0x83   : > { %2726 = vmatpush1.bf16.msra.mxu0 %v4418_v3  ;;  %3013 = vmatpush1.bf16.msra.mxu1 %v4421_v4  ;;  %v4513_v3 = vld [vmem:[%s6245_s1 + $0x5c8] ss:$16 sps:$4 sm:$0xff]   ;;  %v4518_v4 = vld [vmem:[%s6245_s1 + $0x5e4] ss:$16 sps:$4 sm:$0xff]  }
  0x84   : > { %2736 = vmatprep.subr.bf16.mxu0 %v4428_v5  ;;  %3023 = vmatprep.subr.bf16.mxu1 %v4431_v6  ;;  %v4521_v5 = vld [vmem:[%s6245_s1 + $0x5ec] ss:$16 sps:$4 sm:$0xff]   ;;  %v4516_v6 = vld [vmem:[%s6245_s1 + $0x5e0] ss:$16 sps:$4 sm:$0xff]  }
  0x86   : > { %2728 = vmatmul.mubr.bf16.vlgmr.msra.gmra.mrb[0].mxu0 %v3672_v7  ;;  %3015 = vmatmul.mubr.bf16.vlgmr.msra.gmra.mrb[0].mxu1 %v3672_v7  ;;  %v4519_v7 = vld [vmem:[%s6245_s1 + $0x5e8] ss:$16 sps:$4 sm:$0xff]  }
  0x87   : > { %2737 = vmatpush1.bf16.msra.mxu0 %v4426_v8  ;;  %3024 = vmatpush1.bf16.msra.mxu1 %v4429_v9  ;;  %v4526_v8 = vld [vmem:[%s6245_s1 + $0x604] ss:$16 sps:$4 sm:$0xff]   ;;  %v4529_v9 = vld [vmem:[%s6245_s1 + $0x60c] ss:$16 sps:$4 sm:$0xff]  }
  0x88   : > { %2738 = vmatprep.subr.bf16.mxu0 %v4434_v10  ;;  %3025 = vmatprep.subr.bf16.mxu1 %v4437_v12  ;;  %v4524_v10 = vld [vmem:[%s6245_s1 + $0x600] ss:$16 sps:$4 sm:$0xff]   ;;  %v3674_v12 = vcombine.low %v5330_v11, %v5330_v11 }
  0x89   : > { %2768 = vmatprep.mubr.bf16.mxu0 %v3675_v13  ;;  %3055 = vmatprep.mubr.bf16.mxu1 %v3675_v13  ;;  %v4527_v13 = vld [vmem:[%s6245_s1 + $0x608] ss:$16 sps:$4 sm:$0xff]  }
  0x8b   : > { %2739 = vmatpush1.bf16.msra.mxu0 %v4432_v14  ;;  %3026 = vmatpush1.bf16.msra.mxu1 %v4435_v15  ;;  %v5526_v14 = vld [vmem:[%s5052_s17 + $0x18] sm:$0xff]  ;;  %v4532_v15 = vld [vmem:[%s6245_s1 + $0x624] ss:$16 sps:$4 sm:$0xff]  }
  0x8c   : > { %2740 = vmatprep.subr.bf16.mxu0 %v4440_v16  ;;  %3027 = vmatprep.subr.bf16.mxu1 %v4443_v17  ;;  %v4535_v16 = vld [vmem:[%s6245_s1 + $0x62c] ss:$16 sps:$4 sm:$0xff]   ;;  %v3677_v11 = vcombine.high %v5526_v14, %v5526_v14  ;;  %v4530_v17 = vld [vmem:[%s6245_s1 + $0x620] ss:$16 sps:$4 sm:$0xff]  }
  0x8f   : > { %2741 = vmatpush1.bf16.msra.mxu0 %v4438_v18  ;;  %3028 = vmatpush1.bf16.msra.mxu1 %v4441_v19  ;;  %v4533_v18 = vld [vmem:[%s6245_s1 + $0x628] ss:$16 sps:$4 sm:$0xff]   ;;  %v4538_v19 = vld [vmem:[%s6245_s1 + $0x644] ss:$16 sps:$4 sm:$0xff]  }
  0x90   : > { %2742 = vmatprep.subr.bf16.mxu0 %v4446_v20  ;;  %3029 = vmatprep.subr.bf16.mxu1 %v4449_v21  ;;  %v4541_v20 = vld [vmem:[%s6245_s1 + $0x64c] ss:$16 sps:$4 sm:$0xff]   ;;  %v4536_v21 = vld [vmem:[%s6245_s1 + $0x640] ss:$16 sps:$4 sm:$0xff]  }
  0x93   : > { %2743 = vmatpush1.bf16.msra.mxu0 %v4444_v22  ;;  %3030 = vmatpush1.bf16.msra.mxu1 %v4447_v23  ;;  %v4539_v22 = vld [vmem:[%s6245_s1 + $0x648] ss:$16 sps:$4 sm:$0xff]   ;;  %v4544_v23 = vld [vmem:[%s6245_s1 + $0x664] ss:$16 sps:$4 sm:$0xff]  }
  0x94   : > { %2744 = vmatprep.subr.bf16.mxu0 %v4452_v24  ;;  %3031 = vmatprep.subr.bf16.mxu1 %v4455_v25  ;;  %v4547_v24 = vld [vmem:[%s6245_s1 + $0x66c] ss:$16 sps:$4 sm:$0xff]   ;;  %v4542_v25 = vld [vmem:[%s6245_s1 + $0x660] ss:$16 sps:$4 sm:$0xff]  }
  0x97   : > { %2745 = vmatpush1.bf16.msra.mxu0 %v4450_v26  ;;  %3032 = vmatpush1.bf16.msra.mxu1 %v4453_v27  ;;  %v4545_v26 = vld [vmem:[%s6245_s1 + $0x668] ss:$16 sps:$4 sm:$0xff]   ;;  %v4550_v27 = vld [vmem:[%s6245_s1 + $0x684] ss:$16 sps:$4 sm:$0xff]  }
  0x98   : > { %2746 = vmatprep.subr.bf16.mxu0 %v4458_v28  ;;  %3033 = vmatprep.subr.bf16.mxu1 %v4461_v29  ;;  %v4553_v28 = vld [vmem:[%s6245_s1 + $0x68c] ss:$16 sps:$4 sm:$0xff]   ;;  %v4548_v29 = vld [vmem:[%s6245_s1 + $0x680] ss:$16 sps:$4 sm:$0xff]  }
  0x9b   : > { %2747 = vmatpush1.bf16.msra.mxu0 %v4456_v30  ;;  %3034 = vmatpush1.bf16.msra.mxu1 %v4459_v31  ;;  %v4551_v30 = vld [vmem:[%s6245_s1 + $0x688] ss:$16 sps:$4 sm:$0xff]   ;;  %v4556_v31 = vld [vmem:[%s6245_s1 + $0x6a4] ss:$16 sps:$4 sm:$0xff]  }
  0x9c   : > { %2748 = vmatprep.subr.bf16.mxu0 %v4464_v32  ;;  %3035 = vmatprep.subr.bf16.mxu1 %v4467_v33  ;;  %v4559_v32 = vld [vmem:[%s6245_s1 + $0x6ac] ss:$16 sps:$4 sm:$0xff]   ;;  %v4554_v33 = vld [vmem:[%s6245_s1 + $0x6a0] ss:$16 sps:$4 sm:$0xff]  }
  0x9f   : > { %2749 = vmatpush1.bf16.msra.mxu0 %v4462_v34  ;;  %3036 = vmatpush1.bf16.msra.mxu1 %v4465_v35  ;;  %v4557_v34 = vld [vmem:[%s6245_s1 + $0x6a8] ss:$16 sps:$4 sm:$0xff]   ;;  %v4562_v35 = vld [vmem:[%s6245_s1 + $0x6c4] ss:$16 sps:$4 sm:$0xff]  }
  0xa0   : > { %2750 = vmatprep.subr.bf16.mxu0 %v4470_v36  ;;  %3037 = vmatprep.subr.bf16.mxu1 %v4473_v37  ;;  %v4565_v36 = vld [vmem:[%s6245_s1 + $0x6cc] ss:$16 sps:$4 sm:$0xff]   ;;  %v4560_v37 = vld [vmem:[%s6245_s1 + $0x6c0] ss:$16 sps:$4 sm:$0xff]  }
  0xa3   : > { %2751 = vmatpush1.bf16.msra.mxu0 %v4468_v38  ;;  %3038 = vmatpush1.bf16.msra.mxu1 %v4471_v39  ;;  %v4563_v38 = vld [vmem:[%s6245_s1 + $0x6c8] ss:$16 sps:$4 sm:$0xff]   ;;  %v4568_v39 = vld [vmem:[%s6245_s1 + $0x6e4] ss:$16 sps:$4 sm:$0xff]  }
  0xa4   : > { %2752 = vmatprep.subr.bf16.mxu0 %v4476_v40  ;;  %3039 = vmatprep.subr.bf16.mxu1 %v4479_v41  ;;  %v4571_v40 = vld [vmem:[%s6245_s1 + $0x6ec] ss:$16 sps:$4 sm:$0xff]   ;;  %v4566_v41 = vld [vmem:[%s6245_s1 + $0x6e0] ss:$16 sps:$4 sm:$0xff]  }
  0xa7   : > { %2753 = vmatpush1.bf16.msra.mxu0 %v4474_v42  ;;  %3040 = vmatpush1.bf16.msra.mxu1 %v4477_v43  ;;  %v4569_v42 = vld [vmem:[%s6245_s1 + $0x6e8] ss:$16 sps:$4 sm:$0xff]   ;;  %v4574_v43 = vld [vmem:[%s6245_s1 + $0x704] ss:$16 sps:$4 sm:$0xff]  }
  0xa8   : > { %2754 = vmatprep.subr.bf16.mxu0 %v4482_v44  ;;  %3041 = vmatprep.subr.bf16.mxu1 %v4485_v45  ;;  %v4577_v44 = vld [vmem:[%s6245_s1 + $0x70c] ss:$16 sps:$4 sm:$0xff]   ;;  %v4572_v45 = vld [vmem:[%s6245_s1 + $0x700] ss:$16 sps:$4 sm:$0xff]  }
  0xab   : > { %2755 = vmatpush1.bf16.msra.mxu0 %v4480_v46  ;;  %3042 = vmatpush1.bf16.msra.mxu1 %v4483_v47  ;;  %v4575_v46 = vld [vmem:[%s6245_s1 + $0x708] ss:$16 sps:$4 sm:$0xff]   ;;  %v4580_v47 = vld [vmem:[%s6245_s1 + $0x724] ss:$16 sps:$4 sm:$0xff]  }
  0xac   : > { %2756 = vmatprep.subr.bf16.mxu0 %v4488_v48  ;;  %3043 = vmatprep.subr.bf16.mxu1 %v4491_v49  ;;  %v4583_v48 = vld [vmem:[%s6245_s1 + $0x72c] ss:$16 sps:$4 sm:$0xff]   ;;  %v4578_v49 = vld [vmem:[%s6245_s1 + $0x720] ss:$16 sps:$4 sm:$0xff]  }
  0xaf   : > { %2757 = vmatpush1.bf16.msra.mxu0 %v4486_v50  ;;  %3044 = vmatpush1.bf16.msra.mxu1 %v4489_v51  ;;  %v4581_v50 = vld [vmem:[%s6245_s1 + $0x728] ss:$16 sps:$4 sm:$0xff]   ;;  %v4586_v51 = vld [vmem:[%s6245_s1 + $0x744] ss:$16 sps:$4 sm:$0xff]  }
  0xb0   : > { %2758 = vmatprep.subr.bf16.mxu0 %v4494_v52  ;;  %3045 = vmatprep.subr.bf16.mxu1 %v4497_v53  ;;  %v4589_v52 = vld [vmem:[%s6245_s1 + $0x74c] ss:$16 sps:$4 sm:$0xff]   ;;  %v4584_v53 = vld [vmem:[%s6245_s1 + $0x740] ss:$16 sps:$4 sm:$0xff]  }
  0xb3   : > { %2759 = vmatpush1.bf16.msra.mxu0 %v4492_v54  ;;  %3046 = vmatpush1.bf16.msra.mxu1 %v4495_v55  ;;  %v4587_v54 = vld [vmem:[%s6245_s1 + $0x748] ss:$16 sps:$4 sm:$0xff]   ;;  %v4592_v55 = vld [vmem:[%s6245_s1 + $0x764] ss:$16 sps:$4 sm:$0xff]  }
  0xb4   : > { %2760 = vmatprep.subr.bf16.mxu0 %v4500_v56  ;;  %3047 = vmatprep.subr.bf16.mxu1 %v4503_v57  ;;  %v4595_v56 = vld [vmem:[%s6245_s1 + $0x76c] ss:$16 sps:$4 sm:$0xff]   ;;  %v4590_v57 = vld [vmem:[%s6245_s1 + $0x760] ss:$16 sps:$4 sm:$0xff]  }
  0xb7   : > { %2761 = vmatpush1.bf16.msra.mxu0 %v4498_v58  ;;  %3048 = vmatpush1.bf16.msra.mxu1 %v4501_v59  ;;  %v4593_v58 = vld [vmem:[%s6245_s1 + $0x768] ss:$16 sps:$4 sm:$0xff]   ;;  %v4598_v59 = vld [vmem:[%s6245_s1 + $0x784] ss:$16 sps:$4 sm:$0xff]  }
  0xb8   : > { %2762 = vmatprep.subr.bf16.mxu0 %v4506_v60  ;;  %3049 = vmatprep.subr.bf16.mxu1 %v4509_v61  ;;  %v4601_v60 = vld [vmem:[%s6245_s1 + $0x78c] ss:$16 sps:$4 sm:$0xff]   ;;  %v4596_v61 = vld [vmem:[%s6245_s1 + $0x780] ss:$16 sps:$4 sm:$0xff]  }
  0xbb   : > { %2763 = vmatpush1.bf16.msra.mxu0 %v4504_v62  ;;  %3050 = vmatpush1.bf16.msra.mxu1 %v4507_v63  ;;  %v4599_v62 = vld [vmem:[%s6245_s1 + $0x788] ss:$16 sps:$4 sm:$0xff]   ;;  %v4604_v63 = vld [vmem:[%s6245_s1 + $0x7a4] ss:$16 sps:$4 sm:$0xff]  }
  0xbc   : > { %2764 = vmatprep.subr.bf16.mxu0 %v4512_v0  ;;  %3051 = vmatprep.subr.bf16.mxu1 %v4515_v1  ;;  %v4607_v0 = vld [vmem:[%s6245_s1 + $0x7ac] ss:$16 sps:$4 sm:$0xff]   ;;  %v4602_v1 = vld [vmem:[%s6245_s1 + $0x7a0] ss:$16 sps:$4 sm:$0xff]  }
  0xbf   : > { %2765 = vmatpush1.bf16.msra.mxu0 %v4510_v2  ;;  %3052 = vmatpush1.bf16.msra.mxu1 %v4513_v3  ;;  %v4605_v2 = vld [vmem:[%s6245_s1 + $0x7a8] ss:$16 sps:$4 sm:$0xff]   ;;  %v4610_v3 = vld [vmem:[%s6245_s1 + $0x7c4] ss:$16 sps:$4 sm:$0xff]  }
  0xc0   : > { %2766 = vmatprep.subr.bf16.mxu0 %v4518_v4  ;;  %3053 = vmatprep.subr.bf16.mxu1 %v4521_v5  ;;  %v4613_v4 = vld [vmem:[%s6245_s1 + $0x7cc] ss:$16 sps:$4 sm:$0xff]   ;;  %v4608_v5 = vld [vmem:[%s6245_s1 + $0x7c0] ss:$16 sps:$4 sm:$0xff]  }
  0xc3   : > { %2767 = vmatpush1.bf16.msra.mxu0 %v4516_v6  ;;  %3054 = vmatpush1.bf16.msra.mxu1 %v4519_v7  ;;  %v4611_v6 = vld [vmem:[%s6245_s1 + $0x7c8] ss:$16 sps:$4 sm:$0xff]   ;;  %v4616_v7 = vld [vmem:[%s6245_s1 + $0x7e4] ss:$16 sps:$4 sm:$0xff]  }
  0xc4   : > { %2777 = vmatprep.subr.bf16.mxu0 %v4526_v8  ;;  %3064 = vmatprep.subr.bf16.mxu1 %v4529_v9  ;;  %v4619_v8 = vld [vmem:[%s6245_s1 + $0x7ec] ss:$16 sps:$4 sm:$0xff]   ;;  %v4614_v9 = vld [vmem:[%s6245_s1 + $0x7e0] ss:$16 sps:$4 sm:$0xff]  }
  0xc6   : > { %2769 = vmatmul.mubr.bf16.vlgmr.msra.gmra.mrb[0].mxu0 %v3674_v12  ;;  %3056 = vmatmul.mubr.bf16.vlgmr.msra.gmra.mrb[0].mxu1 %v3674_v12  ;;  %v4624_v12 = vld [vmem:[%s6245_s1 + $0x804] ss:$16 sps:$4 sm:$0xff]  }
  0xc7   : > { %2778 = vmatpush1.bf16.msra.mxu0 %v4524_v10  ;;  %3065 = vmatpush1.bf16.msra.mxu1 %v4527_v13  ;;  %v4617_v10 = vld [vmem:[%s6245_s1 + $0x7e8] ss:$16 sps:$4 sm:$0xff]   ;;  %v4627_v13 = vld [vmem:[%s6245_s1 + $0x80c] ss:$16 sps:$4 sm:$0xff]  }
  0xc8   : > { %2779 = vmatprep.subr.bf16.mxu0 %v4532_v15  ;;  %3066 = vmatprep.subr.bf16.mxu1 %v4535_v16  ;;  %v4622_v15 = vld [vmem:[%s6245_s1 + $0x800] ss:$16 sps:$4 sm:$0xff]   ;;  %v3676_v16 = vcombine.low %v5526_v14, %v5526_v14 }
  0xc9   : > { %2809 = vmatprep.mubr.bf16.mxu0 %v3677_v11  ;;  %3096 = vmatprep.mubr.bf16.mxu1 %v3677_v11  ;;  %v5722_v11 = vld [vmem:[%s5052_s17 + $0x20] sm:$0xff] }
  0xca   : > { %v3679_v14 = vcombine.high %v5722_v11, %v5722_v11 }
  0xcb   : > { %2780 = vmatpush1.bf16.msra.mxu0 %v4530_v17  ;;  %3067 = vmatpush1.bf16.msra.mxu1 %v4533_v18  ;;  %v4625_v17 = vld [vmem:[%s6245_s1 + $0x808] ss:$16 sps:$4 sm:$0xff]   ;;  %v4630_v18 = vld [vmem:[%s6245_s1 + $0x824] ss:$16 sps:$4 sm:$0xff]  }
  0xcc   : > { %2781 = vmatprep.subr.bf16.mxu0 %v4538_v19  ;;  %3068 = vmatprep.subr.bf16.mxu1 %v4541_v20  ;;  %v4633_v19 = vld [vmem:[%s6245_s1 + $0x82c] ss:$16 sps:$4 sm:$0xff]   ;;  %v4628_v20 = vld [vmem:[%s6245_s1 + $0x820] ss:$16 sps:$4 sm:$0xff]  }
  0xcf   : > { %2782 = vmatpush1.bf16.msra.mxu0 %v4536_v21  ;;  %3069 = vmatpush1.bf16.msra.mxu1 %v4539_v22  ;;  %v4631_v21 = vld [vmem:[%s6245_s1 + $0x828] ss:$16 sps:$4 sm:$0xff]   ;;  %v4636_v22 = vld [vmem:[%s6245_s1 + $0x844] ss:$16 sps:$4 sm:$0xff]  }
  0xd0   : > { %2783 = vmatprep.subr.bf16.mxu0 %v4544_v23  ;;  %3070 = vmatprep.subr.bf16.mxu1 %v4547_v24  ;;  %v4639_v23 = vld [vmem:[%s6245_s1 + $0x84c] ss:$16 sps:$4 sm:$0xff]   ;;  %v4634_v24 = vld [vmem:[%s6245_s1 + $0x840] ss:$16 sps:$4 sm:$0xff]  }
  0xd3   : > { %2784 = vmatpush1.bf16.msra.mxu0 %v4542_v25  ;;  %3071 = vmatpush1.bf16.msra.mxu1 %v4545_v26  ;;  %v4637_v25 = vld [vmem:[%s6245_s1 + $0x848] ss:$16 sps:$4 sm:$0xff]   ;;  %v4642_v26 = vld [vmem:[%s6245_s1 + $0x864] ss:$16 sps:$4 sm:$0xff]  }
  0xd4   : > { %2785 = vmatprep.subr.bf16.mxu0 %v4550_v27  ;;  %3072 = vmatprep.subr.bf16.mxu1 %v4553_v28  ;;  %v4645_v27 = vld [vmem:[%s6245_s1 + $0x86c] ss:$16 sps:$4 sm:$0xff]   ;;  %v4640_v28 = vld [vmem:[%s6245_s1 + $0x860] ss:$16 sps:$4 sm:$0xff]  }
  0xd7   : > { %2786 = vmatpush1.bf16.msra.mxu0 %v4548_v29  ;;  %3073 = vmatpush1.bf16.msra.mxu1 %v4551_v30  ;;  %v4643_v29 = vld [vmem:[%s6245_s1 + $0x868] ss:$16 sps:$4 sm:$0xff]   ;;  %v4648_v30 = vld [vmem:[%s6245_s1 + $0x884] ss:$16 sps:$4 sm:$0xff]  }
  0xd8   : > { %2787 = vmatprep.subr.bf16.mxu0 %v4556_v31  ;;  %3074 = vmatprep.subr.bf16.mxu1 %v4559_v32  ;;  %v4651_v31 = vld [vmem:[%s6245_s1 + $0x88c] ss:$16 sps:$4 sm:$0xff]   ;;  %v4646_v32 = vld [vmem:[%s6245_s1 + $0x880] ss:$16 sps:$4 sm:$0xff]  }
  0xdb   : > { %2788 = vmatpush1.bf16.msra.mxu0 %v4554_v33  ;;  %3075 = vmatpush1.bf16.msra.mxu1 %v4557_v34  ;;  %v4649_v33 = vld [vmem:[%s6245_s1 + $0x888] ss:$16 sps:$4 sm:$0xff]   ;;  %v4654_v34 = vld [vmem:[%s6245_s1 + $0x8a4] ss:$16 sps:$4 sm:$0xff]  }
  0xdc   : > { %2789 = vmatprep.subr.bf16.mxu0 %v4562_v35  ;;  %3076 = vmatprep.subr.bf16.mxu1 %v4565_v36  ;;  %v4657_v35 = vld [vmem:[%s6245_s1 + $0x8ac] ss:$16 sps:$4 sm:$0xff]   ;;  %v4652_v36 = vld [vmem:[%s6245_s1 + $0x8a0] ss:$16 sps:$4 sm:$0xff]  }
  0xdf   : > { %2790 = vmatpush1.bf16.msra.mxu0 %v4560_v37  ;;  %3077 = vmatpush1.bf16.msra.mxu1 %v4563_v38  ;;  %v4655_v37 = vld [vmem:[%s6245_s1 + $0x8a8] ss:$16 sps:$4 sm:$0xff]   ;;  %v4660_v38 = vld [vmem:[%s6245_s1 + $0x8c4] ss:$16 sps:$4 sm:$0xff]  }
  0xe0   : > { %2791 = vmatprep.subr.bf16.mxu0 %v4568_v39  ;;  %3078 = vmatprep.subr.bf16.mxu1 %v4571_v40  ;;  %v4663_v39 = vld [vmem:[%s6245_s1 + $0x8cc] ss:$16 sps:$4 sm:$0xff]   ;;  %v4658_v40 = vld [vmem:[%s6245_s1 + $0x8c0] ss:$16 sps:$4 sm:$0xff]  }
  0xe3   : > { %2792 = vmatpush1.bf16.msra.mxu0 %v4566_v41  ;;  %3079 = vmatpush1.bf16.msra.mxu1 %v4569_v42  ;;  %v4661_v41 = vld [vmem:[%s6245_s1 + $0x8c8] ss:$16 sps:$4 sm:$0xff]   ;;  %v4666_v42 = vld [vmem:[%s6245_s1 + $0x8e4] ss:$16 sps:$4 sm:$0xff]  }
  0xe4   : > { %2793 = vmatprep.subr.bf16.mxu0 %v4574_v43  ;;  %3080 = vmatprep.subr.bf16.mxu1 %v4577_v44  ;;  %v4669_v43 = vld [vmem:[%s6245_s1 + $0x8ec] ss:$16 sps:$4 sm:$0xff]   ;;  %v4664_v44 = vld [vmem:[%s6245_s1 + $0x8e0] ss:$16 sps:$4 sm:$0xff]  }
  0xe7   : > { %2794 = vmatpush1.bf16.msra.mxu0 %v4572_v45  ;;  %3081 = vmatpush1.bf16.msra.mxu1 %v4575_v46  ;;  %v4667_v45 = vld [vmem:[%s6245_s1 + $0x8e8] ss:$16 sps:$4 sm:$0xff]   ;;  %v4672_v46 = vld [vmem:[%s6245_s1 + $0x904] ss:$16 sps:$4 sm:$0xff]  }
  0xe8   : > { %2795 = vmatprep.subr.bf16.mxu0 %v4580_v47  ;;  %3082 = vmatprep.subr.bf16.mxu1 %v4583_v48  ;;  %v4675_v47 = vld [vmem:[%s6245_s1 + $0x90c] ss:$16 sps:$4 sm:$0xff]   ;;  %v4670_v48 = vld [vmem:[%s6245_s1 + $0x900] ss:$16 sps:$4 sm:$0xff]  }
  0xeb   : > { %2796 = vmatpush1.bf16.msra.mxu0 %v4578_v49  ;;  %3083 = vmatpush1.bf16.msra.mxu1 %v4581_v50  ;;  %v4673_v49 = vld [vmem:[%s6245_s1 + $0x908] ss:$16 sps:$4 sm:$0xff]   ;;  %v4678_v50 = vld [vmem:[%s6245_s1 + $0x924] ss:$16 sps:$4 sm:$0xff]  }
  0xec   : > { %2797 = vmatprep.subr.bf16.mxu0 %v4586_v51  ;;  %3084 = vmatprep.subr.bf16.mxu1 %v4589_v52  ;;  %v4681_v51 = vld [vmem:[%s6245_s1 + $0x92c] ss:$16 sps:$4 sm:$0xff]   ;;  %v4676_v52 = vld [vmem:[%s6245_s1 + $0x920] ss:$16 sps:$4 sm:$0xff]  }
  0xef   : > { %2798 = vmatpush1.bf16.msra.mxu0 %v4584_v53  ;;  %3085 = vmatpush1.bf16.msra.mxu1 %v4587_v54  ;;  %v4679_v53 = vld [vmem:[%s6245_s1 + $0x928] ss:$16 sps:$4 sm:$0xff]   ;;  %v4684_v54 = vld [vmem:[%s6245_s1 + $0x944] ss:$16 sps:$4 sm:$0xff]  }
  0xf0   : > { %2799 = vmatprep.subr.bf16.mxu0 %v4592_v55  ;;  %3086 = vmatprep.subr.bf16.mxu1 %v4595_v56  ;;  %v4687_v55 = vld [vmem:[%s6245_s1 + $0x94c] ss:$16 sps:$4 sm:$0xff]   ;;  %v4682_v56 = vld [vmem:[%s6245_s1 + $0x940] ss:$16 sps:$4 sm:$0xff]  }
  0xf3   : > { %2800 = vmatpush1.bf16.msra.mxu0 %v4590_v57  ;;  %3087 = vmatpush1.bf16.msra.mxu1 %v4593_v58  ;;  %v4685_v57 = vld [vmem:[%s6245_s1 + $0x948] ss:$16 sps:$4 sm:$0xff]   ;;  %v4690_v58 = vld [vmem:[%s6245_s1 + $0x964] ss:$16 sps:$4 sm:$0xff]  }
  0xf4   : > { %2801 = vmatprep.subr.bf16.mxu0 %v4598_v59  ;;  %3088 = vmatprep.subr.bf16.mxu1 %v4601_v60  ;;  %v4693_v59 = vld [vmem:[%s6245_s1 + $0x96c] ss:$16 sps:$4 sm:$0xff]   ;;  %v4688_v60 = vld [vmem:[%s6245_s1 + $0x960] ss:$16 sps:$4 sm:$0xff]  }
  0xf7   : > { %2802 = vmatpush1.bf16.msra.mxu0 %v4596_v61  ;;  %3089 = vmatpush1.bf16.msra.mxu1 %v4599_v62  ;;  %v4691_v61 = vld [vmem:[%s6245_s1 + $0x968] ss:$16 sps:$4 sm:$0xff]   ;;  %v4696_v62 = vld [vmem:[%s6245_s1 + $0x984] ss:$16 sps:$4 sm:$0xff]  }
  0xf8   : > { %2803 = vmatprep.subr.bf16.mxu0 %v4604_v63  ;;  %3090 = vmatprep.subr.bf16.mxu1 %v4607_v0  ;;  %v4699_v63 = vld [vmem:[%s6245_s1 + $0x98c] ss:$16 sps:$4 sm:$0xff]   ;;  %v4694_v0 = vld [vmem:[%s6245_s1 + $0x980] ss:$16 sps:$4 sm:$0xff]  }
  0xfb   : > { %2804 = vmatpush1.bf16.msra.mxu0 %v4602_v1  ;;  %3091 = vmatpush1.bf16.msra.mxu1 %v4605_v2  ;;  %v4697_v1 = vld [vmem:[%s6245_s1 + $0x988] ss:$16 sps:$4 sm:$0xff]   ;;  %v4702_v2 = vld [vmem:[%s6245_s1 + $0x9a4] ss:$16 sps:$4 sm:$0xff]  }
  0xfc   : > { %2805 = vmatprep.subr.bf16.mxu0 %v4610_v3  ;;  %3092 = vmatprep.subr.bf16.mxu1 %v4613_v4  ;;  %v4705_v3 = vld [vmem:[%s6245_s1 + $0x9ac] ss:$16 sps:$4 sm:$0xff]   ;;  %v4700_v4 = vld [vmem:[%s6245_s1 + $0x9a0] ss:$16 sps:$4 sm:$0xff]  }
  0xff   : > { %2806 = vmatpush1.bf16.msra.mxu0 %v4608_v5  ;;  %3093 = vmatpush1.bf16.msra.mxu1 %v4611_v6  ;;  %v4703_v5 = vld [vmem:[%s6245_s1 + $0x9a8] ss:$16 sps:$4 sm:$0xff]   ;;  %v4708_v6 = vld [vmem:[%s6245_s1 + $0x9c4] ss:$16 sps:$4 sm:$0xff]  }
 0x100   : > { %2807 = vmatprep.subr.bf16.mxu0 %v4616_v7  ;;  %3094 = vmatprep.subr.bf16.mxu1 %v4619_v8  ;;  %v4711_v7 = vld [vmem:[%s6245_s1 + $0x9cc] ss:$16 sps:$4 sm:$0xff]   ;;  %v4706_v8 = vld [vmem:[%s6245_s1 + $0x9c0] ss:$16 sps:$4 sm:$0xff]  }
 0x103   : > { %2808 = vmatpush1.bf16.msra.mxu0 %v4614_v9  ;;  %3095 = vmatpush1.bf16.msra.mxu1 %v4617_v10  ;;  %v4709_v9 = vld [vmem:[%s6245_s1 + $0x9c8] ss:$16 sps:$4 sm:$0xff]   ;;  %v4714_v10 = vld [vmem:[%s6245_s1 + $0x9e4] ss:$16 sps:$4 sm:$0xff]  }
 0x104   : > { %2818 = vmatprep.subr.bf16.mxu0 %v4624_v12  ;;  %3105 = vmatprep.subr.bf16.mxu1 %v4627_v13  ;;  %v4717_v12 = vld [vmem:[%s6245_s1 + $0x9ec] ss:$16 sps:$4 sm:$0xff]   ;;  %v4712_v13 = vld [vmem:[%s6245_s1 + $0x9e0] ss:$16 sps:$4 sm:$0xff]  }
 0x106   : > { %2810 = vmatmul.mubr.bf16.vlgmr.msra.gmra.mrb[0].mxu0 %v3676_v16  ;;  %3097 = vmatmul.mubr.bf16.vlgmr.msra.gmra.mrb[0].mxu1 %v3676_v16  ;;  %v4722_v16 = vld [vmem:[%s6245_s1 + $0xa04] ss:$16 sps:$4 sm:$0xff]  }
 0x107   : > { %2819 = vmatpush1.bf16.msra.mxu0 %v4622_v15  ;;  %3106 = vmatpush1.bf16.msra.mxu1 %v4625_v17  ;;  %v4715_v15 = vld [vmem:[%s6245_s1 + $0x9e8] ss:$16 sps:$4 sm:$0xff]   ;;  %v4725_v17 = vld [vmem:[%s6245_s1 + $0xa0c] ss:$16 sps:$4 sm:$0xff]  }
 0x108   : > { %2820 = vmatprep.subr.bf16.mxu0 %v4630_v18  ;;  %3107 = vmatprep.subr.bf16.mxu1 %v4633_v19  ;;  %v3678_v18 = vcombine.low %v5722_v11, %v5722_v11  ;;  %v5918_v19 = vld [vmem:[%s5052_s17 + $0x28] sm:$0xff] }
 0x109   : > { %2850 = vmatprep.mubr.bf16.mxu0 %v3679_v14  ;;  %3137 = vmatprep.mubr.bf16.mxu1 %v3679_v14  ;;  %v4720_v14 = vld [vmem:[%s6245_s1 + $0xa00] ss:$16 sps:$4 sm:$0xff]   ;;  %v4731_v11 = vld [vmem:[%s6245_s1 + $0xa2c] ss:$16 sps:$4 sm:$0xff]  }
 0x10b   : > { %2821 = vmatpush1.bf16.msra.mxu0 %v4628_v20  ;;  %3108 = vmatpush1.bf16.msra.mxu1 %v4631_v21  ;;  %v4723_v20 = vld [vmem:[%s6245_s1 + $0xa08] ss:$16 sps:$4 sm:$0xff]   ;;  %v4728_v21 = vld [vmem:[%s6245_s1 + $0xa24] ss:$16 sps:$4 sm:$0xff]  }
 0x10c   : > { %2822 = vmatprep.subr.bf16.mxu0 %v4636_v22  ;;  %3109 = vmatprep.subr.bf16.mxu1 %v4639_v23  ;;  %v3681_v22 = vcombine.high %v5918_v19, %v5918_v19  ;;  %v4726_v23 = vld [vmem:[%s6245_s1 + $0xa20] ss:$16 sps:$4 sm:$0xff]  }
 0x10f   : > { %2823 = vmatpush1.bf16.msra.mxu0 %v4634_v24  ;;  %3110 = vmatpush1.bf16.msra.mxu1 %v4637_v25  ;;  %v4729_v24 = vld [vmem:[%s6245_s1 + $0xa28] ss:$16 sps:$4 sm:$0xff]   ;;  %v4734_v25 = vld [vmem:[%s6245_s1 + $0xa44] ss:$16 sps:$4 sm:$0xff]  }
 0x110   : > { %2824 = vmatprep.subr.bf16.mxu0 %v4642_v26  ;;  %3111 = vmatprep.subr.bf16.mxu1 %v4645_v27  ;;  %v4737_v26 = vld [vmem:[%s6245_s1 + $0xa4c] ss:$16 sps:$4 sm:$0xff]   ;;  %v4732_v27 = vld [vmem:[%s6245_s1 + $0xa40] ss:$16 sps:$4 sm:$0xff]  }
 0x113   : > { %2825 = vmatpush1.bf16.msra.mxu0 %v4640_v28  ;;  %3112 = vmatpush1.bf16.msra.mxu1 %v4643_v29  ;;  %v4735_v28 = vld [vmem:[%s6245_s1 + $0xa48] ss:$16 sps:$4 sm:$0xff]   ;;  %v4740_v29 = vld [vmem:[%s6245_s1 + $0xa64] ss:$16 sps:$4 sm:$0xff]  }
 0x114   : > { %2826 = vmatprep.subr.bf16.mxu0 %v4648_v30  ;;  %3113 = vmatprep.subr.bf16.mxu1 %v4651_v31  ;;  %v4743_v30 = vld [vmem:[%s6245_s1 + $0xa6c] ss:$16 sps:$4 sm:$0xff]   ;;  %v4738_v31 = vld [vmem:[%s6245_s1 + $0xa60] ss:$16 sps:$4 sm:$0xff]  }
 0x117   : > { %2827 = vmatpush1.bf16.msra.mxu0 %v4646_v32  ;;  %3114 = vmatpush1.bf16.msra.mxu1 %v4649_v33  ;;  %v4741_v32 = vld [vmem:[%s6245_s1 + $0xa68] ss:$16 sps:$4 sm:$0xff]   ;;  %v4746_v33 = vld [vmem:[%s6245_s1 + $0xa84] ss:$16 sps:$4 sm:$0xff]  }
 0x118   : > { %2828 = vmatprep.subr.bf16.mxu0 %v4654_v34  ;;  %3115 = vmatprep.subr.bf16.mxu1 %v4657_v35  ;;  %v4749_v34 = vld [vmem:[%s6245_s1 + $0xa8c] ss:$16 sps:$4 sm:$0xff]   ;;  %v4744_v35 = vld [vmem:[%s6245_s1 + $0xa80] ss:$16 sps:$4 sm:$0xff]  }
 0x11b   : > { %2829 = vmatpush1.bf16.msra.mxu0 %v4652_v36  ;;  %3116 = vmatpush1.bf16.msra.mxu1 %v4655_v37  ;;  %v4747_v36 = vld [vmem:[%s6245_s1 + $0xa88] ss:$16 sps:$4 sm:$0xff]   ;;  %v4752_v37 = vld [vmem:[%s6245_s1 + $0xaa4] ss:$16 sps:$4 sm:$0xff]  }
 0x11c   : > { %2830 = vmatprep.subr.bf16.mxu0 %v4660_v38  ;;  %3117 = vmatprep.subr.bf16.mxu1 %v4663_v39  ;;  %v4755_v38 = vld [vmem:[%s6245_s1 + $0xaac] ss:$16 sps:$4 sm:$0xff]   ;;  %v4750_v39 = vld [vmem:[%s6245_s1 + $0xaa0] ss:$16 sps:$4 sm:$0xff]  }
 0x11f   : > { %2831 = vmatpush1.bf16.msra.mxu0 %v4658_v40  ;;  %3118 = vmatpush1.bf16.msra.mxu1 %v4661_v41  ;;  %v4753_v40 = vld [vmem:[%s6245_s1 + $0xaa8] ss:$16 sps:$4 sm:$0xff]   ;;  %v4758_v41 = vld [vmem:[%s6245_s1 + $0xac4] ss:$16 sps:$4 sm:$0xff]  }
 0x120   : > { %2832 = vmatprep.subr.bf16.mxu0 %v4666_v42  ;;  %3119 = vmatprep.subr.bf16.mxu1 %v4669_v43  ;;  %v4761_v42 = vld [vmem:[%s6245_s1 + $0xacc] ss:$16 sps:$4 sm:$0xff]   ;;  %v4756_v43 = vld [vmem:[%s6245_s1 + $0xac0] ss:$16 sps:$4 sm:$0xff]  }
 0x123   : > { %2833 = vmatpush1.bf16.msra.mxu0 %v4664_v44  ;;  %3120 = vmatpush1.bf16.msra.mxu1 %v4667_v45  ;;  %v4759_v44 = vld [vmem:[%s6245_s1 + $0xac8] ss:$16 sps:$4 sm:$0xff]   ;;  %v4764_v45 = vld [vmem:[%s6245_s1 + $0xae4] ss:$16 sps:$4 sm:$0xff]  }
 0x124   : > { %2834 = vmatprep.subr.bf16.mxu0 %v4672_v46  ;;  %3121 = vmatprep.subr.bf16.mxu1 %v4675_v47  ;;  %v4767_v46 = vld [vmem:[%s6245_s1 + $0xaec] ss:$16 sps:$4 sm:$0xff]   ;;  %v4762_v47 = vld [vmem:[%s6245_s1 + $0xae0] ss:$16 sps:$4 sm:$0xff]  }
 0x127   : > { %2835 = vmatpush1.bf16.msra.mxu0 %v4670_v48  ;;  %3122 = vmatpush1.bf16.msra.mxu1 %v4673_v49  ;;  %v4765_v48 = vld [vmem:[%s6245_s1 + $0xae8] ss:$16 sps:$4 sm:$0xff]   ;;  %v4770_v49 = vld [vmem:[%s6245_s1 + $0xb04] ss:$16 sps:$4 sm:$0xff]  }
 0x128   : > { %2836 = vmatprep.subr.bf16.mxu0 %v4678_v50  ;;  %3123 = vmatprep.subr.bf16.mxu1 %v4681_v51  ;;  %v4773_v50 = vld [vmem:[%s6245_s1 + $0xb0c] ss:$16 sps:$4 sm:$0xff]   ;;  %v4768_v51 = vld [vmem:[%s6245_s1 + $0xb00] ss:$16 sps:$4 sm:$0xff]  }
 0x12b   : > { %2837 = vmatpush1.bf16.msra.mxu0 %v4676_v52  ;;  %3124 = vmatpush1.bf16.msra.mxu1 %v4679_v53  ;;  %v4771_v52 = vld [vmem:[%s6245_s1 + $0xb08] ss:$16 sps:$4 sm:$0xff]   ;;  %v4776_v53 = vld [vmem:[%s6245_s1 + $0xb24] ss:$16 sps:$4 sm:$0xff]  }
 0x12c   : > { %2838 = vmatprep.subr.bf16.mxu0 %v4684_v54  ;;  %3125 = vmatprep.subr.bf16.mxu1 %v4687_v55  ;;  %v4779_v54 = vld [vmem:[%s6245_s1 + $0xb2c] ss:$16 sps:$4 sm:$0xff]   ;;  %v4774_v55 = vld [vmem:[%s6245_s1 + $0xb20] ss:$16 sps:$4 sm:$0xff]  }
 0x12f   : > { %2839 = vmatpush1.bf16.msra.mxu0 %v4682_v56  ;;  %3126 = vmatpush1.bf16.msra.mxu1 %v4685_v57  ;;  %v4777_v56 = vld [vmem:[%s6245_s1 + $0xb28] ss:$16 sps:$4 sm:$0xff]   ;;  %v4782_v57 = vld [vmem:[%s6245_s1 + $0xb44] ss:$16 sps:$4 sm:$0xff]  }
 0x130   : > { %2840 = vmatprep.subr.bf16.mxu0 %v4690_v58  ;;  %3127 = vmatprep.subr.bf16.mxu1 %v4693_v59  ;;  %v4785_v58 = vld [vmem:[%s6245_s1 + $0xb4c] ss:$16 sps:$4 sm:$0xff]   ;;  %v4780_v59 = vld [vmem:[%s6245_s1 + $0xb40] ss:$16 sps:$4 sm:$0xff]  }
 0x133   : > { %2841 = vmatpush1.bf16.msra.mxu0 %v4688_v60  ;;  %3128 = vmatpush1.bf16.msra.mxu1 %v4691_v61  ;;  %v4783_v60 = vld [vmem:[%s6245_s1 + $0xb48] ss:$16 sps:$4 sm:$0xff]   ;;  %v4788_v61 = vld [vmem:[%s6245_s1 + $0xb64] ss:$16 sps:$4 sm:$0xff]  }
 0x134   : > { %2842 = vmatprep.subr.bf16.mxu0 %v4696_v62  ;;  %3129 = vmatprep.subr.bf16.mxu1 %v4699_v63  ;;  %v4791_v62 = vld [vmem:[%s6245_s1 + $0xb6c] ss:$16 sps:$4 sm:$0xff]   ;;  %v4786_v63 = vld [vmem:[%s6245_s1 + $0xb60] ss:$16 sps:$4 sm:$0xff]  }
 0x137   : > { %2843 = vmatpush1.bf16.msra.mxu0 %v4694_v0  ;;  %3130 = vmatpush1.bf16.msra.mxu1 %v4697_v1  ;;  %v4789_v0 = vld [vmem:[%s6245_s1 + $0xb68] ss:$16 sps:$4 sm:$0xff]   ;;  %v4794_v1 = vld [vmem:[%s6245_s1 + $0xb84] ss:$16 sps:$4 sm:$0xff]  }
 0x138   : > { %2844 = vmatprep.subr.bf16.mxu0 %v4702_v2  ;;  %3131 = vmatprep.subr.bf16.mxu1 %v4705_v3  ;;  %v4797_v2 = vld [vmem:[%s6245_s1 + $0xb8c] ss:$16 sps:$4 sm:$0xff]   ;;  %v4792_v3 = vld [vmem:[%s6245_s1 + $0xb80] ss:$16 sps:$4 sm:$0xff]  }
 0x13b   : > { %2845 = vmatpush1.bf16.msra.mxu0 %v4700_v4  ;;  %3132 = vmatpush1.bf16.msra.mxu1 %v4703_v5  ;;  %v4795_v4 = vld [vmem:[%s6245_s1 + $0xb88] ss:$16 sps:$4 sm:$0xff]   ;;  %v4800_v5 = vld [vmem:[%s6245_s1 + $0xba4] ss:$16 sps:$4 sm:$0xff]  }
 0x13c   : > { %2846 = vmatprep.subr.bf16.mxu0 %v4708_v6  ;;  %3133 = vmatprep.subr.bf16.mxu1 %v4711_v7  ;;  %v4803_v6 = vld [vmem:[%s6245_s1 + $0xbac] ss:$16 sps:$4 sm:$0xff]   ;;  %v4798_v7 = vld [vmem:[%s6245_s1 + $0xba0] ss:$16 sps:$4 sm:$0xff]  }
 0x13f   : > { %2847 = vmatpush1.bf16.msra.mxu0 %v4706_v8  ;;  %3134 = vmatpush1.bf16.msra.mxu1 %v4709_v9  ;;  %v4801_v8 = vld [vmem:[%s6245_s1 + $0xba8] ss:$16 sps:$4 sm:$0xff]   ;;  %v4806_v9 = vld [vmem:[%s6245_s1 + $0xbc4] ss:$16 sps:$4 sm:$0xff]  }
 0x140   : > { %2848 = vmatprep.subr.bf16.mxu0 %v4714_v10  ;;  %3135 = vmatprep.subr.bf16.mxu1 %v4717_v12  ;;  %v4809_v10 = vld [vmem:[%s6245_s1 + $0xbcc] ss:$16 sps:$4 sm:$0xff]   ;;  %v4804_v12 = vld [vmem:[%s6245_s1 + $0xbc0] ss:$16 sps:$4 sm:$0xff]  }
 0x143   : > { %2849 = vmatpush1.bf16.msra.mxu0 %v4712_v13  ;;  %3136 = vmatpush1.bf16.msra.mxu1 %v4715_v15  ;;  %v4807_v13 = vld [vmem:[%s6245_s1 + $0xbc8] ss:$16 sps:$4 sm:$0xff]   ;;  %v4812_v15 = vld [vmem:[%s6245_s1 + $0xbe4] ss:$16 sps:$4 sm:$0xff]  }
 0x144   : > { %2859 = vmatprep.subr.bf16.mxu0 %v4722_v16  ;;  %3146 = vmatprep.subr.bf16.mxu1 %v4725_v17  ;;  %v4815_v16 = vld [vmem:[%s6245_s1 + $0xbec] ss:$16 sps:$4 sm:$0xff]   ;;  %v4810_v17 = vld [vmem:[%s6245_s1 + $0xbe0] ss:$16 sps:$4 sm:$0xff]  }
 0x146   : > { %2851 = vmatmul.mubr.bf16.vlgmr.msra.gmra.mrb[0].mxu0 %v3678_v18  ;;  %3138 = vmatmul.mubr.bf16.vlgmr.msra.gmra.mrb[0].mxu1 %v3678_v18  ;;  %v4813_v18 = vld [vmem:[%s6245_s1 + $0xbe8] ss:$16 sps:$4 sm:$0xff]  }
 0x147   : > { %2860 = vmatpush1.bf16.msra.mxu0 %v4720_v14  ;;  %3147 = vmatpush1.bf16.msra.mxu1 %v4723_v20  ;;  %v4820_v14 = vld [vmem:[%s6245_s1 + $0xc04] ss:$16 sps:$4 sm:$0xff]   ;;  %v4823_v20 = vld [vmem:[%s6245_s1 + $0xc0c] ss:$16 sps:$4 sm:$0xff]  }
 0x148   : > { %2861 = vmatprep.subr.bf16.mxu0 %v4728_v21  ;;  %3148 = vmatprep.subr.bf16.mxu1 %v4731_v11  ;;  %v3680_v21 = vcombine.low %v5918_v19, %v5918_v19  ;;  %v4818_v11 = vld [vmem:[%s6245_s1 + $0xc00] ss:$16 sps:$4 sm:$0xff]   ;;  %v4829_v19 = vld [vmem:[%s6245_s1 + $0xc2c] ss:$16 sps:$4 sm:$0xff]  }
 0x149   : > { %2891 = vmatprep.mubr.bf16.mxu0 %v3681_v22  ;;  %3178 = vmatprep.mubr.bf16.mxu1 %v3681_v22  ;;  %v4821_v22 = vld [vmem:[%s6245_s1 + $0xc08] ss:$16 sps:$4 sm:$0xff]  }
 0x14b   : > { %2862 = vmatpush1.bf16.msra.mxu0 %v4726_v23  ;;  %3149 = vmatpush1.bf16.msra.mxu1 %v4729_v24  ;;  %v4826_v23 = vld [vmem:[%s6245_s1 + $0xc24] ss:$16 sps:$4 sm:$0xff]   ;;  %v4824_v24 = vld [vmem:[%s6245_s1 + $0xc20] ss:$16 sps:$4 sm:$0xff]  }
 0x14c   : > { %2863 = vmatprep.subr.bf16.mxu0 %v4734_v25  ;;  %3150 = vmatprep.subr.bf16.mxu1 %v4737_v26  ;;  %v4827_v25 = vld [vmem:[%s6245_s1 + $0xc28] ss:$16 sps:$4 sm:$0xff]   ;;  %v4831_v26 = vld [vmem:[%s6247_s3 + $0x40] sm:$0xff]  }
 0x14f   : > { %2864 = vmatpush1.bf16.msra.mxu0 %v4732_v27  ;;  %3151 = vmatpush1.bf16.msra.mxu1 %v4735_v28  ;;  %v4832_v27 = vld [vmem:[%s6247_s3 + $0xc0] sm:$0xff]   ;;  %v4871_v28 = vmov 0  }
 0x150   : > { %2865 = vmatprep.subr.bf16.mxu0 %v4740_v29  ;;  %3152 = vmatprep.subr.bf16.mxu1 %v4743_v30  ;;  %v4830_v29 = vld [vmem:[%s5052_s17 + $0x30] ss:$0 sps:$4 sm:$0xff]   ;;  %v4833_v30 = vld [vmem:[%s6247_s3] sm:$0xff]  }
 0x153   : > { %2866 = vmatpush1.bf16.msra.mxu0 %v4738_v31  ;;  %3153 = vmatpush1.bf16.msra.mxu1 %v4741_v32  ;;  %v4834_v31 = vld [vmem:[%s6247_s3 + $0x80] sm:$0xff]   ;;  %v4835_v32 = vld [vmem:[%s6247_s3 + $0x48] sm:$0xff]  }
 0x154   : > { %2867 = vmatprep.subr.bf16.mxu0 %v4746_v33  ;;  %3154 = vmatprep.subr.bf16.mxu1 %v4749_v34  ;;  %v4836_v33 = vld [vmem:[%s6247_s3 + $0xc8] sm:$0xff]  }
 0x155   : > { %v4837_v34 = vld [vmem:[%s6247_s3 + $0x8] sm:$0xff]  }
 0x157   : > { %2868 = vmatpush1.bf16.msra.mxu0 %v4744_v35  ;;  %3155 = vmatpush1.bf16.msra.mxu1 %v4747_v36  ;;  %v4838_v35 = vld [vmem:[%s6247_s3 + $0x88] sm:$0xff]   ;;  %v4839_v36 = vld [vmem:[%s6247_s3 + $0x50] sm:$0xff]  }
 0x158   : > { %2869 = vmatprep.subr.bf16.mxu0 %v4752_v37  ;;  %3156 = vmatprep.subr.bf16.mxu1 %v4755_v38  ;;  %v4840_v37 = vld [vmem:[%s6247_s3 + $0xd0] sm:$0xff]  }
 0x159   : > { %v4841_v38 = vld [vmem:[%s6247_s3 + $0x10] sm:$0xff]  }
 0x15b   : > { %2870 = vmatpush1.bf16.msra.mxu0 %v4750_v39  ;;  %3157 = vmatpush1.bf16.msra.mxu1 %v4753_v40  ;;  %v4842_v39 = vld [vmem:[%s6247_s3 + $0x90] sm:$0xff]   ;;  %v4843_v40 = vld [vmem:[%s6247_s3 + $0x58] sm:$0xff]  }
 0x15c   : > { %2871 = vmatprep.subr.bf16.mxu0 %v4758_v41  ;;  %3158 = vmatprep.subr.bf16.mxu1 %v4761_v42  ;;  %v4844_v41 = vld [vmem:[%s6247_s3 + $0xd8] sm:$0xff]  }
 0x15d   : > { %v4845_v42 = vld [vmem:[%s6247_s3 + $0x18] sm:$0xff]  }
 0x15f   : > { %2872 = vmatpush1.bf16.msra.mxu0 %v4756_v43  ;;  %3159 = vmatpush1.bf16.msra.mxu1 %v4759_v44  ;;  %v4846_v43 = vld [vmem:[%s6247_s3 + $0x98] sm:$0xff]   ;;  %v4847_v44 = vld [vmem:[%s6247_s3 + $0x60] sm:$0xff]  }
 0x160   : > { %2873 = vmatprep.subr.bf16.mxu0 %v4764_v45  ;;  %3160 = vmatprep.subr.bf16.mxu1 %v4767_v46  ;;  %v4848_v45 = vld [vmem:[%s6247_s3 + $0xe0] sm:$0xff]  }
 0x161   : > { %v4849_v46 = vld [vmem:[%s6247_s3 + $0x20] sm:$0xff]  }
 0x163   : > { %2874 = vmatpush1.bf16.msra.mxu0 %v4762_v47  ;;  %3161 = vmatpush1.bf16.msra.mxu1 %v4765_v48  ;;  %v4850_v47 = vld [vmem:[%s6247_s3 + $0xa0] sm:$0xff]   ;;  %v4851_v48 = vld [vmem:[%s6247_s3 + $0x68] sm:$0xff]  }
 0x164   : > { %2875 = vmatprep.subr.bf16.mxu0 %v4770_v49  ;;  %3162 = vmatprep.subr.bf16.mxu1 %v4773_v50  ;;  %v4852_v49 = vld [vmem:[%s6247_s3 + $0xe8] sm:$0xff]  }
 0x165   : > { %v4853_v50 = vld [vmem:[%s6247_s3 + $0x28] sm:$0xff]  }
 0x167   : > { %2876 = vmatpush1.bf16.msra.mxu0 %v4768_v51  ;;  %3163 = vmatpush1.bf16.msra.mxu1 %v4771_v52  ;;  %v4854_v51 = vld [vmem:[%s6247_s3 + $0xa8] sm:$0xff]   ;;  %v4855_v52 = vld [vmem:[%s6247_s3 + $0x70] sm:$0xff]  }
 0x168   : > { %2877 = vmatprep.subr.bf16.mxu0 %v4776_v53  ;;  %3164 = vmatprep.subr.bf16.mxu1 %v4779_v54  ;;  %v4856_v53 = vld [vmem:[%s6247_s3 + $0xf0] sm:$0xff]  }
 0x169   : > { %v4857_v54 = vld [vmem:[%s6247_s3 + $0x30] sm:$0xff]  }
 0x16b   : > { %2878 = vmatpush1.bf16.msra.mxu0 %v4774_v55  ;;  %3165 = vmatpush1.bf16.msra.mxu1 %v4777_v56  ;;  %v4858_v55 = vld [vmem:[%s6247_s3 + $0xb0] sm:$0xff]   ;;  %v4859_v56 = vld [vmem:[%s6247_s3 + $0x78] sm:$0xff]  }
 0x16c   : > { %2879 = vmatprep.subr.bf16.mxu0 %v4782_v57  ;;  %3166 = vmatprep.subr.bf16.mxu1 %v4785_v58  ;;  %v4860_v57 = vld [vmem:[%s6247_s3 + $0xf8] sm:$0xff]  }
 0x16d   : > { %v4861_v58 = vld [vmem:[%s6247_s3 + $0x38] sm:$0xff]  }
 0x16f   : > { %2880 = vmatpush1.bf16.msra.mxu0 %v4780_v59  ;;  %3167 = vmatpush1.bf16.msra.mxu1 %v4783_v60  ;;  %v4862_v59 = vld [vmem:[%s6247_s3 + $0xb8] sm:$0xff]   ;;  %v625_v60 = vlaneseq }
 0x170   : > { %2881 = vmatprep.subr.bf16.mxu0 %v4788_v61  ;;  %3168 = vmatprep.subr.bf16.mxu1 %v4791_v62 }
 0x171   : > { %v626_v61 = vshrl.u32 %v625_v60, 7 }
 0x173   : > { %2882 = vmatpush1.bf16.msra.mxu0 %v4786_v63  ;;  %3169 = vmatpush1.bf16.msra.mxu1 %v4789_v0  ;;  %v627_v62 = vsub.s32 0, %v626_v61  ;;  %v635_v63 = vsub.s32 2, %v626_v61  ;;  %v623_v0 = vld [vmem:[%s6246_s2] sm:$0xf] }
 0x174   : > { %2883 = vmatprep.subr.bf16.mxu0 %v4794_v1  ;;  %3170 = vmatprep.subr.bf16.mxu1 %v4797_v2  ;;  %v631_v1 = vsub.s32 1, %v626_v61  ;;  %v639_v2 = vsub.s32 3, %v626_v61 }
 0x177   : > { %2884 = vmatpush1.bf16.msra.mxu0 %v4792_v3  ;;  %3171 = vmatpush1.bf16.msra.mxu1 %v4795_v4  ;;  %v628_v3 = vrot.slane %v623_v0, %v627_v62  ;;  %v636_v4 = vrot.slane %v623_v0, %v635_v63 }
 0x178   : > { %2885 = vmatprep.subr.bf16.mxu0 %v4800_v5  ;;  %3172 = vmatprep.subr.bf16.mxu1 %v4803_v6  ;;  %v632_v5 = vrot.slane %v623_v0, %v631_v1  ;;  %v640_v6 = vrot.slane %v623_v0, %v639_v2 }
 0x17b   : > { %2886 = vmatpush1.bf16.msra.mxu0 %v4798_v7  ;;  %3173 = vmatpush1.bf16.msra.mxu1 %v4801_v8 }
 0x17c   : > { %2887 = vmatprep.subr.bf16.mxu0 %v4806_v9  ;;  %3174 = vmatprep.subr.bf16.mxu1 %v4809_v10 }
 0x17f   : > { %2888 = vmatpush1.bf16.msra.mxu0 %v4804_v12  ;;  %3175 = vmatpush1.bf16.msra.mxu1 %v4807_v13 }
 0x180   : > { %2889 = vmatprep.subr.bf16.mxu0 %v4812_v15  ;;  %3176 = vmatprep.subr.bf16.mxu1 %v4815_v16 }
 0x183   : > { %2890 = vmatpush1.bf16.msra.mxu0 %v4810_v17  ;;  %3177 = vmatpush1.bf16.msra.mxu1 %v4813_v18 }
 0x184   : > { %2900 = vmatprep.subr.bf16.mxu0 %v4820_v14  ;;  %3187 = vmatprep.subr.bf16.mxu1 %v4823_v20 }
 0x186   : > { %2892 = vmatmul.mubr.bf16.vlgmr.msra.gmra.mrb[0].mxu0 %v3680_v21  ;;  %3179 = vmatmul.mubr.bf16.vlgmr.msra.gmra.mrb[0].mxu1 %v3680_v21 }
 0x187   : > { %2901 = vmatpush1.bf16.msra.mxu0 %v4818_v11  ;;  %3188 = vmatpush1.bf16.msra.mxu1 %v4821_v22 }
 0x188   : > { %2902 = vmatprep.subr.bf16.mxu0 %v4826_v23  ;;  %3189 = vmatprep.subr.bf16.mxu1 %v4829_v19 }
 0x189   : > { %2932 = vmatprep.mubr.bf16.mxu0 %v4871_v28  ;;  %3219 = vmatprep.mubr.bf16.mxu1 %v4871_v28 }
 0x18b   : > { %2903 = vmatpush1.bf16.msra.mxu0 %v4824_v24  ;;  %3190 = vmatpush1.bf16.msra.mxu1 %v4827_v25 }
 0x18c   : > { %4124 = vmatprep.subr.bf16.mxu0 %v4831_v26  ;;  %4146 = vmatprep.subr.bf16.mxu1 %v4832_v27 }
 0x192   : > { %4075 = vmatmul.mubr.msk.bf16.vlgmr.msra.gmra.mrb[0].mxu0 %vm2650_vm0, %v4830_v29  ;;  %4076 = vmatmul.mubr.msk.bf16.vlgmr.msra.gmra.mrb[0].mxu1 %vm2650_vm0, %v4830_v29  ;;  %v4079_v29 = vld [vmem:[%s6248_s4] ss:$0 sm:$0xff] }
 0x193   : > { %4125 = vmatpush3.bf16.msra.mxu0 %v4833_v30  ;;  %4147 = vmatpush3.bf16.msra.mxu1 %v4834_v31 }
 0x194   : > { %4126 = vmatprep.subr.bf16.mxu0 %v4835_v32  ;;  %4148 = vmatprep.subr.bf16.mxu1 %v4836_v33 }
 0x197   : > { %4127 = vmatpush3.bf16.msra.mxu0 %v4837_v34  ;;  %4149 = vmatpush3.bf16.msra.mxu1 %v4838_v35 }
 0x198   : > { %4128 = vmatprep.subr.bf16.mxu0 %v4839_v36  ;;  %4150 = vmatprep.subr.bf16.mxu1 %v4840_v37 }
 0x19b   : > { %4129 = vmatpush3.bf16.msra.mxu0 %v4841_v38  ;;  %4151 = vmatpush3.bf16.msra.mxu1 %v4842_v39 }
 0x19c   : > { %4130 = vmatprep.subr.bf16.mxu0 %v4843_v40  ;;  %4152 = vmatprep.subr.bf16.mxu1 %v4844_v41 }
 0x19f   : > { %4131 = vmatpush3.bf16.msra.mxu0 %v4845_v42  ;;  %4153 = vmatpush3.bf16.msra.mxu1 %v4846_v43 }
 0x1a0   : > { %4132 = vmatprep.subr.bf16.mxu0 %v4847_v44  ;;  %4154 = vmatprep.subr.bf16.mxu1 %v4848_v45 }
 0x1a3   : > { %4133 = vmatpush3.bf16.msra.mxu0 %v4849_v46  ;;  %4155 = vmatpush3.bf16.msra.mxu1 %v4850_v47 }
 0x1a4   : > { %4134 = vmatprep.subr.bf16.mxu0 %v4851_v48  ;;  %4156 = vmatprep.subr.bf16.mxu1 %v4852_v49 }
 0x1a7   : > { %4135 = vmatpush3.bf16.msra.mxu0 %v4853_v50  ;;  %4157 = vmatpush3.bf16.msra.mxu1 %v4854_v51 }
 0x1a8   : > { %4136 = vmatprep.subr.bf16.mxu0 %v4855_v52  ;;  %4158 = vmatprep.subr.bf16.mxu1 %v4856_v53 }
 0x1ab   : > { %4137 = vmatpush3.bf16.msra.mxu0 %v4857_v54  ;;  %4159 = vmatpush3.bf16.msra.mxu1 %v4858_v55 }
 0x1ac   : > { %4138 = vmatprep.subr.bf16.mxu0 %v4859_v56  ;;  %4160 = vmatprep.subr.bf16.mxu1 %v4860_v57 }
 0x1af   : > { %4139 = vmatpush3.bf16.msra.mxu0 %v4861_v58  ;;  %4161 = vmatpush3.bf16.msra.mxu1 %v4862_v59 }
 0x265   : > { %v2934_v7 = vpop.f32.mrb[0].mxu0  ;;  %v3221_v8 = vpop.f32.mrb[0].mxu1 }
 0x266   : > { %v4168_v9 = vadd.f32 %v2934_v7, %v628_v3  ;;  %v4170_v10 = vadd.f32 %v3221_v8, %v636_v4  ;;  %v2936_v12 = vpop.f32.mrb[1].mxu0  ;;  %v3223_v13 = vpop.f32.mrb[1].mxu1 }
 0x267   : > { %v4169_v15 = vadd.f32 %v2936_v12, %v632_v5  ;;  %v4171_v16 = vadd.f32 %v3223_v13, %v640_v6  ;;  %v2938_v17 = vpop.f32.mrb[2].mxu0  ;;  %v3225_v18 = vpop.f32.mrb[2].mxu1 }
 0x268   : > { %v3228_v14 = vmax.f32 %v4168_v9, 0.0  ;;  %v3230_v20 = vmax.f32 %v4170_v10, 0.0  ;;  %v2939_v21 = vpop.f32.mrb[3].mxu0  ;;  %v3226_v11 = vpop.f32.mrb[3].mxu1 }
 0x269   : > { %v3229_v22 = vmax.f32 %v4169_v15, 0.0  ;;  %v3231_v23 = vmax.f32 %v4171_v16, 0.0 }
 0x26a   : > { %v4120_v25 = vpack.c.bf16 %v3228_v14, %v3228_v14  ;;  %v4122_v26 = vpack.c.bf16 %v3230_v20, %v3230_v20 }
 0x26b   : > { %v4121_v19 = vpack.c.bf16 %v3229_v22, %v3229_v22  ;;  %v4123_v24 = vpack.c.bf16 %v3231_v23, %v3231_v23 }
 0x26d   : > { %3561 = vmatprep.mubr.bf16.mxu0 %v4121_v19  ;;  %3601 = vmatprep.mubr.bf16.mxu1 %v4123_v24 }
 0x26e   : > { %3562 = vmatmul.mubr.bf16.vlgmr.msra.gmra.mrb[4].mxu0 %v4120_v25  ;;  %3602 = vmatmul.mubr.bf16.vlgmr.msra.gmra.mrb[4].mxu1 %v4122_v26 }
 0x341   : > { %v4140_v27 = vpop.f32.mrb[4].mxu0  ;;  %v4162_v28 = vpop.f32.mrb[4].mxu1 }
 0x342   : > { %v4141_v30 = vpop.f32.mrb[5].mxu0  ;;  %v4163_v31 = vpop.f32.mrb[5].mxu1 }
 0x343   : > { %v4142_v32 = vadd.f32 %v4141_v30, %v4140_v27  ;;  %v4164_v33 = vadd.f32 %v4163_v31, %v4162_v28  ;;  %v4143_v34 = vpop.f32.mrb[6].mxu0  ;;  %v4165_v35 = vpop.f32.mrb[6].mxu1 }
 0x344   : > { %v4144_v36 = vpop.f32.mrb[7].mxu0  ;;  %v4166_v37 = vpop.f32.mrb[7].mxu1 }
 0x345   : > { %v3564_v38 = vadd.f32 %v4142_v32, %v4079_v29 }
 0x347   : > { %v3604_v39 = vadd.f32 %v4164_v33, %v3564_v38 }
 0x349   : > { %3609 = vst [vmem:[%s222_s11] sm:$0xff] %v3604_v39 }
 0x34a PF: > { %s15_s18 = sadd.s32 1, %s4869_s18  }
 0x34b   : > { %p12_p4 = scmp.ge.s32.totalorder %s15_s18, 4  }
 0x34d   :  { %14 = sbr.rel (!%p12_p4) target bundleno = 1 (0x1), region = 70 }

</bundles_post_ra>
